<compile_context>
chip_gen: v7x
topology: tpu7x:2x2x1
jax: 0.10.0
libtpu: 0.0.40
codegen_flags: <defaults>
</compile_context>

<pallas_src>
import functools

import jax
import jax.numpy as jnp
from jax.experimental import pallas as pl
from jax.experimental.pallas import tpu as pltpu


# ----------------------------------------------------------------------------
# Fused kernel: Conv1d(k=5,pad=2) + ReLU + MaxPool1d(2) + LSTM + Linear
# ----------------------------------------------------------------------------
def fused_conv_lstm_kernel(xs_ref, wcat_ref, bconv_ref, wih_ref, whh_ref,
                           blstm_ref, wfc_ref, bfc_ref, o_ref, *, B, Tp):
    # xs_ref   : (2*Tp*B, K*Cin)  pre-gathered im2col rows, time-major;
    #            rows [0, Tp*B)  = even conv-output times (pool slot 0),
    #            rows [Tp*B, ..) = odd  conv-output times (pool slot 1).
    # wcat_ref : (K*Cin, Cout)    im2col conv weight (k-major rows)
    # bconv_ref: (1, Cout)
    # wih_ref  : (Cout, 4*Hp)     = W_ih^T, gate-padded H -> Hp
    # whh_ref  : (Hp, 4*Hp)       = W_hh^T, gate/row padded
    # blstm_ref: (1, 4*Hp)        = b_ih + b_hh, gate-padded
    # wfc_ref  : (Hp, 1)          = W_fc^T, row padded
    # bfc_ref  : (1, 1)
    # o_ref    : (B, 1)
    Hp = whh_ref.shape[0]
    TB = Tp * B

    # ---- conv as one 2-D MXU matmul over pre-gathered im2col rows ----------
    conv = jnp.dot(xs_ref[...], wcat_ref[...],
                   preferred_element_type=jnp.float32)          # (2*TB, Cout)

    # MaxPool1d(2): max over the even/odd halves.  ReLU and the shared bias
    # commute with the max, so pooling is a single vector max.
    pooled = jnp.maximum(
        jnp.maximum(conv[:TB], conv[TB:]) + bconv_ref[...], 0.0)  # (TB, Cout)

    # ---- LSTM: hoisted input projection (all timesteps, one matmul) --------
    xproj = jnp.dot(pooled, wih_ref[...],
                    preferred_element_type=jnp.float32) + blstm_ref[...]  # (TB, 4Hp)

    whh = whh_ref[...]
    h = jnp.zeros((B, Hp), jnp.float32)
    c = jnp.zeros((B, Hp), jnp.float32)
    # Static unroll (Tp known at trace time); every lane slice below is a
    # multiple of Hp = 128, i.e. whole-vreg aligned.
    for t in range(Tp):
        gates = xproj[t * B:(t + 1) * B, :] + jnp.dot(
            h, whh, preferred_element_type=jnp.float32)           # (B, 4Hp)
        i_f = jax.nn.sigmoid(gates[:, :2 * Hp])     # i,f: one EUP dispatch
        g = jnp.tanh(gates[:, 2 * Hp:3 * Hp])
        o = jax.nn.sigmoid(gates[:, 3 * Hp:])
        c = i_f[:, Hp:] * c + i_f[:, :Hp] * g       # f*c + i*g
        h = o * jnp.tanh(c)

    # ---- final Linear (padded rows of wfc are zero) -------------------------
    o_ref[...] = (jnp.dot(h, wfc_ref[...], preferred_element_type=jnp.float32)
                  + bfc_ref[...])


# ----------------------------------------------------------------------------
# One-time parameter packing (outside the per-call path)
# ----------------------------------------------------------------------------
def _pad_gate_cols(w_t, H, Hp):
    # w_t: (n, 4H) with PyTorch gate order i,f,g,o -> (n, 4Hp), each gate block
    # padded H -> Hp with zero columns.
    blocks = [jnp.pad(w_t[:, g * H:(g + 1) * H], ((0, 0), (0, Hp - H)))
              for g in range(4)]
    return jnp.concatenate(blocks, axis=-1)


def pack_params(params):
    w_conv, b_conv, w_ih, w_hh, b_ih, b_hh, w_fc, b_fc = params
    Cout, Cin, K = w_conv.shape
    H = w_hh.shape[1]
    Hp = ((H + 127) // 128) * 128          # lane-align gates to full vregs

    # im2col conv weight: rows ordered (k, cin) to match the tap concatenation.
    wcat = jnp.transpose(w_conv, (2, 1, 0)).reshape(K * Cin, Cout)
    bconv = b_conv.reshape(1, Cout)
    wih = _pad_gate_cols(w_ih.T, H, Hp)                                # (Cout, 4Hp)
    whh = jnp.pad(_pad_gate_cols(w_hh.T, H, Hp), ((0, Hp - H), (0, 0)))  # (Hp, 4Hp)
    blstm = _pad_gate_cols((b_ih + b_hh).reshape(1, 4 * H), H, Hp)     # (1, 4Hp)
    wfc = jnp.pad(w_fc.T, ((0, Hp - H), (0, 0)))                       # (Hp, 1)
    bfc = b_fc.reshape(1, 1)
    return (wcat, bconv, wih, whh, blstm, wfc, bfc)


# ----------------------------------------------------------------------------
# Forward wrapper
# ----------------------------------------------------------------------------
def conv_lstm_classifier_pallas_impl(x, packed):
    wcat, bconv, wih, whh, blstm, wfc, bfc = packed
    B, T, Cin = x.shape
    K = wcat.shape[0] // Cin
    pad = (K - 1) // 2
    Tp = T // 2

    # im2col gather in the wrapper (fused by XLA into the zero-pad):
    # windows[b, t, k*Cin + cin] = xp[b, t + k, cin].
    xp = jnp.pad(x, ((0, 0), (pad, pad), (0, 0)))           # (B, T+K-1, Cin)
    taps = [xp[:, k:k + T, :] for k in range(K)]
    windows = jnp.concatenate(taps, axis=-1)                # (B, T, K*Cin)
    # Time-major, split even/odd conv-output times for the fused max-pool.
    wt = jnp.transpose(windows, (1, 0, 2)).reshape(Tp, 2, B, K * Cin)
    xs = jnp.concatenate([wt[:, 0], wt[:, 1]], axis=0)      # (2*Tp, B, K*Cin)
    xs = xs.reshape(2 * Tp * B, K * Cin)

    kernel = functools.partial(fused_conv_lstm_kernel, B=B, Tp=Tp)
    return pl.pallas_call(
        kernel,
        out_shape=jax.ShapeDtypeStruct((B, 1), jnp.float32),
        in_specs=[pl.BlockSpec(memory_space=pltpu.MemorySpace.VMEM)] * 8,
        out_specs=pl.BlockSpec(memory_space=pltpu.MemorySpace.VMEM),
    )(xs, wcat, bconv, wih, whh, blstm, wfc, bfc)


conv_lstm_classifier_pallas = jax.jit(conv_lstm_classifier_pallas_impl)


# ----------------------------------------------------------------------------
# Pure-JAX reference (mirrors the PyTorch module) for verification
# ----------------------------------------------------------------------------
@jax.jit
def conv_lstm_classifier_ref(x, params):
    (w_conv, b_conv, w_ih, w_hh, b_ih, b_hh, w_fc, b_fc) = params
    xc = jnp.transpose(x, (0, 2, 1))                   # (B, Cin, T)  (NCW)
    y = jax.lax.conv_general_dilated(
        xc, w_conv, window_strides=(1,), padding=[(2, 2)],
        dimension_numbers=('NCH', 'OIH', 'NCH'))
    y = jnp.maximum(y + b_conv[None, :, None], 0.0)
    B, Cout, T = y.shape
    y = y.reshape(B, Cout, T // 2, 2).max(axis=-1)     # MaxPool1d(2)
    y = jnp.transpose(y, (0, 2, 1))                    # (B, T//2, Cout)
    H = w_hh.shape[1]

    def step(carry, xt):
        h, c = carry
        gates = xt @ w_ih.T + b_ih + h @ w_hh.T + b_hh
        i = jax.nn.sigmoid(gates[:, :H])
        f = jax.nn.sigmoid(gates[:, H:2 * H])
        g = jnp.tanh(gates[:, 2 * H:3 * H])
        o = jax.nn.sigmoid(gates[:, 3 * H:])
        c = f * c + i * g
        h = o * jnp.tanh(c)
        return (h, c), None

    h0 = jnp.zeros((B, H), jnp.float32)
    c0 = jnp.zeros((B, H), jnp.float32)
    (h, _), _ = jax.lax.scan(step, (h0, c0), jnp.transpose(y, (1, 0, 2)))
    return h @ w_fc.T + b_fc


def init_params(key, input_dim=2, conv_out=32, hidden=64):
    ks = jax.random.split(key, 8)
    s = 0.1
    w_conv = s * jax.random.normal(ks[0], (conv_out, input_dim, 5), jnp.float32)
    b_conv = s * jax.random.normal(ks[1], (conv_out,), jnp.float32)
    w_ih = s * jax.random.normal(ks[2], (4 * hidden, conv_out), jnp.float32)
    w_hh = s * jax.random.normal(ks[3], (4 * hidden, hidden), jnp.float32)
    b_ih = s * jax.random.normal(ks[4], (4 * hidden,), jnp.float32)
    b_hh = s * jax.random.normal(ks[5], (4 * hidden,), jnp.float32)
    w_fc = s * jax.random.normal(ks[6], (1, hidden), jnp.float32)
    b_fc = s * jax.random.normal(ks[7], (1,), jnp.float32)
    return (w_conv, b_conv, w_ih, w_hh, b_ih, b_hh, w_fc, b_fc)


if __name__ == "__main__":
    key = jax.random.PRNGKey(0)
    k_x, k_p = jax.random.split(key)

    B, T, C_IN = 2, 16, 2          # batch=2, seq=16, input_dim=2
    x = jax.random.normal(k_x, (B, T, C_IN), jnp.float32)
    params = init_params(k_p, input_dim=C_IN, conv_out=32, hidden=64)

    # One-time packing outside the per-call path.
    packed = jax.block_until_ready(pack_params(params))

    out = conv_lstm_classifier_pallas(x, packed)
    out = jax.block_until_ready(out)

    ref = jax.block_until_ready(conv_lstm_classifier_ref(x, params))
    assert out.shape == (B, 1), out.shape
    assert jnp.allclose(out, ref, atol=1e-4, rtol=1e-4), (out, ref)

    print("KERNEL_OK")
</pallas_src>

<mosaic_0001>
module attributes {stable_mosaic.version = 11 : i64} {
  func.func @fused_conv_lstm_kernel(%arg0: memref<32x10xf32, #tpu.memory_space<vmem>>, %arg1: memref<10x32xf32, #tpu.memory_space<vmem>>, %arg2: memref<1x32xf32, #tpu.memory_space<vmem>>, %arg3: memref<32x512xf32, #tpu.memory_space<vmem>>, %arg4: memref<128x512xf32, #tpu.memory_space<vmem>>, %arg5: memref<1x512xf32, #tpu.memory_space<vmem>>, %arg6: memref<128x1xf32, #tpu.memory_space<vmem>>, %arg7: memref<1x1xf32, #tpu.memory_space<vmem>>, %arg8: memref<2x1xf32, #tpu.memory_space<vmem>>) attributes {dimension_semantics = [], scalar_prefetch = 0 : i64, scratch_operands = 0 : i64, tpu.core_type = #tpu.core_type<tc>} {
    %c0 = arith.constant 0 : index
    %c0_0 = arith.constant 0 : index
    %0 = vector.load %arg0[%c0, %c0_0] : memref<32x10xf32, #tpu.memory_space<vmem>>, vector<32x10xf32>
    %c0_1 = arith.constant 0 : index
    %c0_2 = arith.constant 0 : index
    %1 = vector.load %arg1[%c0_1, %c0_2] : memref<10x32xf32, #tpu.memory_space<vmem>>, vector<10x32xf32>
    %cst = arith.constant dense<0.000000e+00> : vector<32x32xf32>
    %2 = tpu.matmul %0, %1, %cst {dimension_numbers = #tpu.dot_dimension_numbers<[1], [0], [0], [1], [0, 0, 1, 1], [], []>} : vector<32x10xf32>, vector<10x32xf32>, vector<32x32xf32> -> vector<32x32xf32>
    %3 = vector.extract_strided_slice %2 {offsets = [0, 0], sizes = [16, 32], strides = [1, 1]} : vector<32x32xf32> to vector<16x32xf32>
    %4 = vector.extract_strided_slice %2 {offsets = [16, 0], sizes = [16, 32], strides = [1, 1]} : vector<32x32xf32> to vector<16x32xf32>
    %5 = arith.maximumf %3, %4 : vector<16x32xf32>
    %c0_3 = arith.constant 0 : index
    %c0_4 = arith.constant 0 : index
    %6 = vector.load %arg2[%c0_3, %c0_4] : memref<1x32xf32, #tpu.memory_space<vmem>>, vector<1x32xf32>
    %7 = vector.broadcast %6 : vector<1x32xf32> to vector<16x32xf32>
    %8 = arith.addf %5, %7 : vector<16x32xf32>
    %cst_5 = arith.constant 0.000000e+00 : f32
    %9 = vector.broadcast %cst_5 : f32 to vector<16x32xf32>
    %10 = arith.maximumf %8, %9 : vector<16x32xf32>
    %c0_6 = arith.constant 0 : index
    %c0_7 = arith.constant 0 : index
    %11 = vector.load %arg3[%c0_6, %c0_7] : memref<32x512xf32, #tpu.memory_space<vmem>>, vector<32x512xf32>
    %cst_8 = arith.constant dense<0.000000e+00> : vector<16x512xf32>
    %12 = tpu.matmul %10, %11, %cst_8 {dimension_numbers = #tpu.dot_dimension_numbers<[1], [0], [0], [1], [0, 0, 1, 1], [], []>} : vector<16x32xf32>, vector<32x512xf32>, vector<16x512xf32> -> vector<16x512xf32>
    %c0_9 = arith.constant 0 : index
    %c0_10 = arith.constant 0 : index
    %13 = vector.load %arg5[%c0_9, %c0_10] : memref<1x512xf32, #tpu.memory_space<vmem>>, vector<1x512xf32>
    %14 = vector.broadcast %13 : vector<1x512xf32> to vector<16x512xf32>
    %15 = arith.addf %12, %14 : vector<16x512xf32>
    %c0_11 = arith.constant 0 : index
    %c0_12 = arith.constant 0 : index
    %16 = vector.load %arg4[%c0_11, %c0_12] : memref<128x512xf32, #tpu.memory_space<vmem>>, vector<128x512xf32>
    %cst_13 = arith.constant 0.000000e+00 : f32
    %17 = vector.broadcast %cst_13 : f32 to vector<2x128xf32>
    %cst_14 = arith.constant 0.000000e+00 : f32
    %18 = vector.broadcast %cst_14 : f32 to vector<2x128xf32>
    %19 = vector.extract_strided_slice %15 {offsets = [0, 0], sizes = [2, 512], strides = [1, 1]} : vector<16x512xf32> to vector<2x512xf32>
    %cst_15 = arith.constant dense<0.000000e+00> : vector<2x512xf32>
    %20 = tpu.matmul %17, %16, %cst_15 {dimension_numbers = #tpu.dot_dimension_numbers<[1], [0], [0], [1], [0, 0, 1, 1], [], []>} : vector<2x128xf32>, vector<128x512xf32>, vector<2x512xf32> -> vector<2x512xf32>
    %21 = arith.addf %19, %20 : vector<2x512xf32>
    %22 = vector.extract_strided_slice %21 {offsets = [0, 0], sizes = [2, 256], strides = [1, 1]} : vector<2x512xf32> to vector<2x256xf32>
    %23 = arith.negf %22 : vector<2x256xf32>
    %24 = math.exp %23 : vector<2x256xf32>
    %cst_16 = arith.constant 1.000000e+00 : f32
    %25 = vector.broadcast %cst_16 : f32 to vector<2x256xf32>
    %26 = arith.addf %25, %24 : vector<2x256xf32>
    %27 = arith.divf %25, %26 : vector<2x256xf32>
    %28 = vector.extract_strided_slice %21 {offsets = [0, 256], sizes = [2, 128], strides = [1, 1]} : vector<2x512xf32> to vector<2x128xf32>
    %29 = math.tanh %28 : vector<2x128xf32>
    %30 = vector.extract_strided_slice %21 {offsets = [0, 384], sizes = [2, 128], strides = [1, 1]} : vector<2x512xf32> to vector<2x128xf32>
    %31 = arith.negf %30 : vector<2x128xf32>
    %32 = math.exp %31 : vector<2x128xf32>
    %cst_17 = arith.constant 1.000000e+00 : f32
    %33 = vector.broadcast %cst_17 : f32 to vector<2x128xf32>
    %34 = arith.addf %33, %32 : vector<2x128xf32>
    %35 = arith.divf %33, %34 : vector<2x128xf32>
    %36 = vector.extract_strided_slice %27 {offsets = [0, 128], sizes = [2, 128], strides = [1, 1]} : vector<2x256xf32> to vector<2x128xf32>
    %37 = arith.mulf %36, %18 : vector<2x128xf32>
    %38 = vector.extract_strided_slice %27 {offsets = [0, 0], sizes = [2, 128], strides = [1, 1]} : vector<2x256xf32> to vector<2x128xf32>
    %39 = arith.mulf %38, %29 : vector<2x128xf32>
    %40 = arith.addf %37, %39 : vector<2x128xf32>
    %41 = math.tanh %40 : vector<2x128xf32>
    %42 = arith.mulf %35, %41 : vector<2x128xf32>
    %43 = vector.extract_strided_slice %15 {offsets = [2, 0], sizes = [2, 512], strides = [1, 1]} : vector<16x512xf32> to vector<2x512xf32>
    %cst_18 = arith.constant dense<0.000000e+00> : vector<2x512xf32>
    %44 = tpu.matmul %42, %16, %cst_18 {dimension_numbers = #tpu.dot_dimension_numbers<[1], [0], [0], [1], [0, 0, 1, 1], [], []>} : vector<2x128xf32>, vector<128x512xf32>, vector<2x512xf32> -> vector<2x512xf32>
    %45 = arith.addf %43, %44 : vector<2x512xf32>
    %46 = vector.extract_strided_slice %45 {offsets = [0, 0], sizes = [2, 256], strides = [1, 1]} : vector<2x512xf32> to vector<2x256xf32>
    %47 = arith.negf %46 : vector<2x256xf32>
    %48 = math.exp %47 : vector<2x256xf32>
    %cst_19 = arith.constant 1.000000e+00 : f32
    %49 = vector.broadcast %cst_19 : f32 to vector<2x256xf32>
    %50 = arith.addf %49, %48 : vector<2x256xf32>
    %51 = arith.divf %49, %50 : vector<2x256xf32>
    %52 = vector.extract_strided_slice %45 {offsets = [0, 256], sizes = [2, 128], strides = [1, 1]} : vector<2x512xf32> to vector<2x128xf32>
    %53 = math.tanh %52 : vector<2x128xf32>
    %54 = vector.extract_strided_slice %45 {offsets = [0, 384], sizes = [2, 128], strides = [1, 1]} : vector<2x512xf32> to vector<2x128xf32>
    %55 = arith.negf %54 : vector<2x128xf32>
    %56 = math.exp %55 : vector<2x128xf32>
    %cst_20 = arith.constant 1.000000e+00 : f32
    %57 = vector.broadcast %cst_20 : f32 to vector<2x128xf32>
    %58 = arith.addf %57, %56 : vector<2x128xf32>
    %59 = arith.divf %57, %58 : vector<2x128xf32>
    %60 = vector.extract_strided_slice %51 {offsets = [0, 128], sizes = [2, 128], strides = [1, 1]} : vector<2x256xf32> to vector<2x128xf32>
    %61 = arith.mulf %60, %40 : vector<2x128xf32>
    %62 = vector.extract_strided_slice %51 {offsets = [0, 0], sizes = [2, 128], strides = [1, 1]} : vector<2x256xf32> to vector<2x128xf32>
    %63 = arith.mulf %62, %53 : vector<2x128xf32>
    %64 = arith.addf %61, %63 : vector<2x128xf32>
    %65 = math.tanh %64 : vector<2x128xf32>
    %66 = arith.mulf %59, %65 : vector<2x128xf32>
    %67 = vector.extract_strided_slice %15 {offsets = [4, 0], sizes = [2, 512], strides = [1, 1]} : vector<16x512xf32> to vector<2x512xf32>
    %cst_21 = arith.constant dense<0.000000e+00> : vector<2x512xf32>
    %68 = tpu.matmul %66, %16, %cst_21 {dimension_numbers = #tpu.dot_dimension_numbers<[1], [0], [0], [1], [0, 0, 1, 1], [], []>} : vector<2x128xf32>, vector<128x512xf32>, vector<2x512xf32> -> vector<2x512xf32>
    %69 = arith.addf %67, %68 : vector<2x512xf32>
    %70 = vector.extract_strided_slice %69 {offsets = [0, 0], sizes = [2, 256], strides = [1, 1]} : vector<2x512xf32> to vector<2x256xf32>
    %71 = arith.negf %70 : vector<2x256xf32>
    %72 = math.exp %71 : vector<2x256xf32>
    %cst_22 = arith.constant 1.000000e+00 : f32
    %73 = vector.broadcast %cst_22 : f32 to vector<2x256xf32>
    %74 = arith.addf %73, %72 : vector<2x256xf32>
    %75 = arith.divf %73, %74 : vector<2x256xf32>
    %76 = vector.extract_strided_slice %69 {offsets = [0, 256], sizes = [2, 128], strides = [1, 1]} : vector<2x512xf32> to vector<2x128xf32>
    %77 = math.tanh %76 : vector<2x128xf32>
    %78 = vector.extract_strided_slice %69 {offsets = [0, 384], sizes = [2, 128], strides = [1, 1]} : vector<2x512xf32> to vector<2x128xf32>
    %79 = arith.negf %78 : vector<2x128xf32>
    %80 = math.exp %79 : vector<2x128xf32>
    %cst_23 = arith.constant 1.000000e+00 : f32
    %81 = vector.broadcast %cst_23 : f32 to vector<2x128xf32>
    %82 = arith.addf %81, %80 : vector<2x128xf32>
    %83 = arith.divf %81, %82 : vector<2x128xf32>
    %84 = vector.extract_strided_slice %75 {offsets = [0, 128], sizes = [2, 128], strides = [1, 1]} : vector<2x256xf32> to vector<2x128xf32>
    %85 = arith.mulf %84, %64 : vector<2x128xf32>
    %86 = vector.extract_strided_slice %75 {offsets = [0, 0], sizes = [2, 128], strides = [1, 1]} : vector<2x256xf32> to vector<2x128xf32>
    %87 = arith.mulf %86, %77 : vector<2x128xf32>
    %88 = arith.addf %85, %87 : vector<2x128xf32>
    %89 = math.tanh %88 : vector<2x128xf32>
    %90 = arith.mulf %83, %89 : vector<2x128xf32>
    %91 = vector.extract_strided_slice %15 {offsets = [6, 0], sizes = [2, 512], strides = [1, 1]} : vector<16x512xf32> to vector<2x512xf32>
    %cst_24 = arith.constant dense<0.000000e+00> : vector<2x512xf32>
    %92 = tpu.matmul %90, %16, %cst_24 {dimension_numbers = #tpu.dot_dimension_numbers<[1], [0], [0], [1], [0, 0, 1, 1], [], []>} : vector<2x128xf32>, vector<128x512xf32>, vector<2x512xf32> -> vector<2x512xf32>
    %93 = arith.addf %91, %92 : vector<2x512xf32>
    %94 = vector.extract_strided_slice %93 {offsets = [0, 0], sizes = [2, 256], strides = [1, 1]} : vector<2x512xf32> to vector<2x256xf32>
    %95 = arith.negf %94 : vector<2x256xf32>
    %96 = math.exp %95 : vector<2x256xf32>
    %cst_25 = arith.constant 1.000000e+00 : f32
    %97 = vector.broadcast %cst_25 : f32 to vector<2x256xf32>
    %98 = arith.addf %97, %96 : vector<2x256xf32>
    %99 = arith.divf %97, %98 : vector<2x256xf32>
    %100 = vector.extract_strided_slice %93 {offsets = [0, 256], sizes = [2, 128], strides = [1, 1]} : vector<2x512xf32> to vector<2x128xf32>
    %101 = math.tanh %100 : vector<2x128xf32>
    %102 = vector.extract_strided_slice %93 {offsets = [0, 384], sizes = [2, 128], strides = [1, 1]} : vector<2x512xf32> to vector<2x128xf32>
    %103 = arith.negf %102 : vector<2x128xf32>
    %104 = math.exp %103 : vector<2x128xf32>
    %cst_26 = arith.constant 1.000000e+00 : f32
    %105 = vector.broadcast %cst_26 : f32 to vector<2x128xf32>
    %106 = arith.addf %105, %104 : vector<2x128xf32>
    %107 = arith.divf %105, %106 : vector<2x128xf32>
    %108 = vector.extract_strided_slice %99 {offsets = [0, 128], sizes = [2, 128], strides = [1, 1]} : vector<2x256xf32> to vector<2x128xf32>
    %109 = arith.mulf %108, %88 : vector<2x128xf32>
    %110 = vector.extract_strided_slice %99 {offsets = [0, 0], sizes = [2, 128], strides = [1, 1]} : vector<2x256xf32> to vector<2x128xf32>
    %111 = arith.mulf %110, %101 : vector<2x128xf32>
    %112 = arith.addf %109, %111 : vector<2x128xf32>
    %113 = math.tanh %112 : vector<2x128xf32>
    %114 = arith.mulf %107, %113 : vector<2x128xf32>
    %115 = vector.extract_strided_slice %15 {offsets = [8, 0], sizes = [2, 512], strides = [1, 1]} : vector<16x512xf32> to vector<2x512xf32>
    %cst_27 = arith.constant dense<0.000000e+00> : vector<2x512xf32>
    %116 = tpu.matmul %114, %16, %cst_27 {dimension_numbers = #tpu.dot_dimension_numbers<[1], [0], [0], [1], [0, 0, 1, 1], [], []>} : vector<2x128xf32>, vector<128x512xf32>, vector<2x512xf32> -> vector<2x512xf32>
    %117 = arith.addf %115, %116 : vector<2x512xf32>
    %118 = vector.extract_strided_slice %117 {offsets = [0, 0], sizes = [2, 256], strides = [1, 1]} : vector<2x512xf32> to vector<2x256xf32>
    %119 = arith.negf %118 : vector<2x256xf32>
    %120 = math.exp %119 : vector<2x256xf32>
    %cst_28 = arith.constant 1.000000e+00 : f32
    %121 = vector.broadcast %cst_28 : f32 to vector<2x256xf32>
    %122 = arith.addf %121, %120 : vector<2x256xf32>
    %123 = arith.divf %121, %122 : vector<2x256xf32>
    %124 = vector.extract_strided_slice %117 {offsets = [0, 256], sizes = [2, 128], strides = [1, 1]} : vector<2x512xf32> to vector<2x128xf32>
    %125 = math.tanh %124 : vector<2x128xf32>
    %126 = vector.extract_strided_slice %117 {offsets = [0, 384], sizes = [2, 128], strides = [1, 1]} : vector<2x512xf32> to vector<2x128xf32>
    %127 = arith.negf %126 : vector<2x128xf32>
    %128 = math.exp %127 : vector<2x128xf32>
    %cst_29 = arith.constant 1.000000e+00 : f32
    %129 = vector.broadcast %cst_29 : f32 to vector<2x128xf32>
    %130 = arith.addf %129, %128 : vector<2x128xf32>
    %131 = arith.divf %129, %130 : vector<2x128xf32>
    %132 = vector.extract_strided_slice %123 {offsets = [0, 128], sizes = [2, 128], strides = [1, 1]} : vector<2x256xf32> to vector<2x128xf32>
    %133 = arith.mulf %132, %112 : vector<2x128xf32>
    %134 = vector.extract_strided_slice %123 {offsets = [0, 0], sizes = [2, 128], strides = [1, 1]} : vector<2x256xf32> to vector<2x128xf32>
    %135 = arith.mulf %134, %125 : vector<2x128xf32>
    %136 = arith.addf %133, %135 : vector<2x128xf32>
    %137 = math.tanh %136 : vector<2x128xf32>
    %138 = arith.mulf %131, %137 : vector<2x128xf32>
    %139 = vector.extract_strided_slice %15 {offsets = [10, 0], sizes = [2, 512], strides = [1, 1]} : vector<16x512xf32> to vector<2x512xf32>
    %cst_30 = arith.constant dense<0.000000e+00> : vector<2x512xf32>
    %140 = tpu.matmul %138, %16, %cst_30 {dimension_numbers = #tpu.dot_dimension_numbers<[1], [0], [0], [1], [0, 0, 1, 1], [], []>} : vector<2x128xf32>, vector<128x512xf32>, vector<2x512xf32> -> vector<2x512xf32>
    %141 = arith.addf %139, %140 : vector<2x512xf32>
    %142 = vector.extract_strided_slice %141 {offsets = [0, 0], sizes = [2, 256], strides = [1, 1]} : vector<2x512xf32> to vector<2x256xf32>
    %143 = arith.negf %142 : vector<2x256xf32>
    %144 = math.exp %143 : vector<2x256xf32>
    %cst_31 = arith.constant 1.000000e+00 : f32
    %145 = vector.broadcast %cst_31 : f32 to vector<2x256xf32>
    %146 = arith.addf %145, %144 : vector<2x256xf32>
    %147 = arith.divf %145, %146 : vector<2x256xf32>
    %148 = vector.extract_strided_slice %141 {offsets = [0, 256], sizes = [2, 128], strides = [1, 1]} : vector<2x512xf32> to vector<2x128xf32>
    %149 = math.tanh %148 : vector<2x128xf32>
    %150 = vector.extract_strided_slice %141 {offsets = [0, 384], sizes = [2, 128], strides = [1, 1]} : vector<2x512xf32> to vector<2x128xf32>
    %151 = arith.negf %150 : vector<2x128xf32>
    %152 = math.exp %151 : vector<2x128xf32>
    %cst_32 = arith.constant 1.000000e+00 : f32
    %153 = vector.broadcast %cst_32 : f32 to vector<2x128xf32>
    %154 = arith.addf %153, %152 : vector<2x128xf32>
    %155 = arith.divf %153, %154 : vector<2x128xf32>
    %156 = vector.extract_strided_slice %147 {offsets = [0, 128], sizes = [2, 128], strides = [1, 1]} : vector<2x256xf32> to vector<2x128xf32>
    %157 = arith.mulf %156, %136 : vector<2x128xf32>
    %158 = vector.extract_strided_slice %147 {offsets = [0, 0], sizes = [2, 128], strides = [1, 1]} : vector<2x256xf32> to vector<2x128xf32>
    %159 = arith.mulf %158, %149 : vector<2x128xf32>
    %160 = arith.addf %157, %159 : vector<2x128xf32>
    %161 = math.tanh %160 : vector<2x128xf32>
    %162 = arith.mulf %155, %161 : vector<2x128xf32>
    %163 = vector.extract_strided_slice %15 {offsets = [12, 0], sizes = [2, 512], strides = [1, 1]} : vector<16x512xf32> to vector<2x512xf32>
    %cst_33 = arith.constant dense<0.000000e+00> : vector<2x512xf32>
    %164 = tpu.matmul %162, %16, %cst_33 {dimension_numbers = #tpu.dot_dimension_numbers<[1], [0], [0], [1], [0, 0, 1, 1], [], []>} : vector<2x128xf32>, vector<128x512xf32>, vector<2x512xf32> -> vector<2x512xf32>
    %165 = arith.addf %163, %164 : vector<2x512xf32>
    %166 = vector.extract_strided_slice %165 {offsets = [0, 0], sizes = [2, 256], strides = [1, 1]} : vector<2x512xf32> to vector<2x256xf32>
    %167 = arith.negf %166 : vector<2x256xf32>
    %168 = math.exp %167 : vector<2x256xf32>
    %cst_34 = arith.constant 1.000000e+00 : f32
    %169 = vector.broadcast %cst_34 : f32 to vector<2x256xf32>
    %170 = arith.addf %169, %168 : vector<2x256xf32>
    %171 = arith.divf %169, %170 : vector<2x256xf32>
    %172 = vector.extract_strided_slice %165 {offsets = [0, 256], sizes = [2, 128], strides = [1, 1]} : vector<2x512xf32> to vector<2x128xf32>
    %173 = math.tanh %172 : vector<2x128xf32>
    %174 = vector.extract_strided_slice %165 {offsets = [0, 384], sizes = [2, 128], strides = [1, 1]} : vector<2x512xf32> to vector<2x128xf32>
    %175 = arith.negf %174 : vector<2x128xf32>
    %176 = math.exp %175 : vector<2x128xf32>
    %cst_35 = arith.constant 1.000000e+00 : f32
    %177 = vector.broadcast %cst_35 : f32 to vector<2x128xf32>
    %178 = arith.addf %177, %176 : vector<2x128xf32>
    %179 = arith.divf %177, %178 : vector<2x128xf32>
    %180 = vector.extract_strided_slice %171 {offsets = [0, 128], sizes = [2, 128], strides = [1, 1]} : vector<2x256xf32> to vector<2x128xf32>
    %181 = arith.mulf %180, %160 : vector<2x128xf32>
    %182 = vector.extract_strided_slice %171 {offsets = [0, 0], sizes = [2, 128], strides = [1, 1]} : vector<2x256xf32> to vector<2x128xf32>
    %183 = arith.mulf %182, %173 : vector<2x128xf32>
    %184 = arith.addf %181, %183 : vector<2x128xf32>
    %185 = math.tanh %184 : vector<2x128xf32>
    %186 = arith.mulf %179, %185 : vector<2x128xf32>
    %187 = vector.extract_strided_slice %15 {offsets = [14, 0], sizes = [2, 512], strides = [1, 1]} : vector<16x512xf32> to vector<2x512xf32>
    %cst_36 = arith.constant dense<0.000000e+00> : vector<2x512xf32>
    %188 = tpu.matmul %186, %16, %cst_36 {dimension_numbers = #tpu.dot_dimension_numbers<[1], [0], [0], [1], [0, 0, 1, 1], [], []>} : vector<2x128xf32>, vector<128x512xf32>, vector<2x512xf32> -> vector<2x512xf32>
    %189 = arith.addf %187, %188 : vector<2x512xf32>
    %190 = vector.extract_strided_slice %189 {offsets = [0, 0], sizes = [2, 256], strides = [1, 1]} : vector<2x512xf32> to vector<2x256xf32>
    %191 = arith.negf %190 : vector<2x256xf32>
    %192 = math.exp %191 : vector<2x256xf32>
    %cst_37 = arith.constant 1.000000e+00 : f32
    %193 = vector.broadcast %cst_37 : f32 to vector<2x256xf32>
    %194 = arith.addf %193, %192 : vector<2x256xf32>
    %195 = arith.divf %193, %194 : vector<2x256xf32>
    %196 = vector.extract_strided_slice %189 {offsets = [0, 256], sizes = [2, 128], strides = [1, 1]} : vector<2x512xf32> to vector<2x128xf32>
    %197 = math.tanh %196 : vector<2x128xf32>
    %198 = vector.extract_strided_slice %189 {offsets = [0, 384], sizes = [2, 128], strides = [1, 1]} : vector<2x512xf32> to vector<2x128xf32>
    %199 = arith.negf %198 : vector<2x128xf32>
    %200 = math.exp %199 : vector<2x128xf32>
    %cst_38 = arith.constant 1.000000e+00 : f32
    %201 = vector.broadcast %cst_38 : f32 to vector<2x128xf32>
    %202 = arith.addf %201, %200 : vector<2x128xf32>
    %203 = arith.divf %201, %202 : vector<2x128xf32>
    %204 = vector.extract_strided_slice %195 {offsets = [0, 128], sizes = [2, 128], strides = [1, 1]} : vector<2x256xf32> to vector<2x128xf32>
    %205 = arith.mulf %204, %184 : vector<2x128xf32>
    %206 = vector.extract_strided_slice %195 {offsets = [0, 0], sizes = [2, 128], strides = [1, 1]} : vector<2x256xf32> to vector<2x128xf32>
    %207 = arith.mulf %206, %197 : vector<2x128xf32>
    %208 = arith.addf %205, %207 : vector<2x128xf32>
    %209 = math.tanh %208 : vector<2x128xf32>
    %210 = arith.mulf %203, %209 : vector<2x128xf32>
    %c0_39 = arith.constant 0 : index
    %c0_40 = arith.constant 0 : index
    %211 = vector.load %arg6[%c0_39, %c0_40] : memref<128x1xf32, #tpu.memory_space<vmem>>, vector<128x1xf32>
    %cst_41 = arith.constant dense<0.000000e+00> : vector<2x1xf32>
    %212 = tpu.matmul %210, %211, %cst_41 {dimension_numbers = #tpu.dot_dimension_numbers<[1], [0], [0], [1], [0, 0, 1, 1], [], []>} : vector<2x128xf32>, vector<128x1xf32>, vector<2x1xf32> -> vector<2x1xf32>
    %c0_42 = arith.constant 0 : index
    %c0_43 = arith.constant 0 : index
    %213 = vector.load %arg7[%c0_42, %c0_43] : memref<1x1xf32, #tpu.memory_space<vmem>>, vector<1x1xf32>
    %214 = vector.broadcast %213 : vector<1x1xf32> to vector<2x1xf32>
    %215 = arith.addf %212, %214 : vector<2x1xf32>
    %c0_44 = arith.constant 0 : index
    %c0_45 = arith.constant 0 : index
    %216 = vector.load %arg8[%c0_44, %c0_45] : memref<2x1xf32, #tpu.memory_space<vmem>>, vector<2x1xf32>
    tpu.vector_store %arg8[%c0_44, %c0_45], %215 {strides = array<i32>} : memref<2x1xf32, #tpu.memory_space<vmem>>, vector<2x1xf32>,
    return
  }
}

</mosaic_0001>

<bundles_post_ra>
// kernel: conv_lstm_classifier_pallas_impl.1
= control target key start
LH: loop header
LB: loop body
LE: loop exit
PB: predicated region body
PF: predicated region fallthrough
CT: control target
= control target key end

     0   :  { %vm50_vm0 = vcmask 1041408   ;;  %vm37_vm1 = vcmask 80896   ;;  %vm2778_vm2 = vmmov 1   ;;  %vm190_vm4 = vcmask 261120   ;;  %s3572_s1 = inlined_call_operand.vmem [shape: f32[10,32], index: 1, kind: input, shape index: {}]   ;;  %s3573_s0 = inlined_call_operand.vmem [shape: f32[32,10], index: 0, kind: input, shape index: {}]   ;;  %s3574_s4 = inlined_call_operand.vmem [shape: f32[128,512], index: 4, kind: input, shape index: {}]   ;;  %s3575_s3 = inlined_call_operand.vmem [shape: f32[32,512], index: 3, kind: input, shape index: {}]   ;;  %s3576_s2 = inlined_call_operand.vmem [shape: f32[1,32], index: 2, kind: input, shape index: {}]   ;;  %s3577_s5 = inlined_call_operand.vmem [shape: f32[1,512], index: 5, kind: input, shape index: {}]   ;;  %s3578_s6 = inlined_call_operand.vmem [shape: f32[128,1], index: 6, kind: input, shape index: {}]   ;;  %s3579_s7 = inlined_call_operand.<no memory space> [shape: f32[1,1], index: 7, kind: input, shape index: {}]   ;;  %s3580_s8 = inlined_call_operand.vmem [shape: f32[2,1], index: 8, kind: output, shape index: {}]  }
   0x1   :  { %v35_v0 = vld [vmem:[%s3572_s1] sm:$0xff]  ;;  %v36_v1 = vld [vmem:[%s3572_s1 + $0x8] sm:$0x3]  ;;  %vm2089_vm3 = vmpackc.low %vm50_vm0, %vm2778_vm2  ;;  %vm2781_vm5 = vmmov 0   ;;  %vm1979_vm6 = vcmask 1024  }
   0x2   :  { %v2088_v2 = vpack.c.bf16 %v36_v1, %v35_v0  ;;  %v31_v3 = vld [vmem:[%s3573_s0] sm:$0xff]  ;;  %v32_v4 = vld [vmem:[%s3573_s0 + $0x8] sm:$0xff]  ;;  %v33_v15 = vld [vmem:[%s3573_s0 + $0x10] sm:$0xff] }
   0x3   :  { %2047 = vmatprep.mubr.msk.f32.mxu0 %vm37_vm1, %v31_v3  ;;  %v352_v5 = vld [vmem:[%s3574_s4 + $0x8] sm:$0xff]  ;;  %v351_v8 = vld [vmem:[%s3574_s4] sm:$0xff]  ;;  %v34_v23 = vld [vmem:[%s3573_s0 + $0x18] sm:$0xff] }
   0x4   :  { %v356_v6 = vld [vmem:[%s3574_s4 + $0x28] sm:$0xff]  ;;  %2090 = vmatprep.subr.msk.bf16.mxu0 %vm2089_vm3, %v2088_v2  ;;  %v355_v9 = vld [vmem:[%s3574_s4 + $0x20] sm:$0xff]  ;;  %v155_v0 = vld [vmem:[%s3575_s3 + $0x18] sm:$0xff] }
   0x5   :  { %v2846_v7 = vpack.c.bf16 %v356_v6, %v352_v5  ;;  %v360_v10 = vld [vmem:[%s3574_s4 + $0x48] sm:$0xff]  ;;  %2093 = vmatpush3.bf16.msk.msra.mxu0 %vm2089_vm3, %v2088_v2  ;;  %v2857_v11 = vpack.c.bf16 %v355_v9, %v351_v8  ;;  %v359_v13 = vld [vmem:[%s3574_s4 + $0x40] sm:$0xff]  ;;  %v159_v1 = vld [vmem:[%s3575_s3 + $0x38] sm:$0xff]  ;;  %v2779_v6 = vmov 0.0  }
   0x6   :  { %v364_v12 = vld [vmem:[%s3574_s4 + $0x68] sm:$0xff]  ;;  %v363_v14 = vld [vmem:[%s3574_s4 + $0x60] sm:$0xff]  ;;  %v2102_v3 = vpack.c.bf16 %v159_v1, %v155_v0  ;;  %479 = vmatprep.mubr.f32.mxu1 %v2779_v6  ;;  %v381_v0 = vld [vmem:[%s3574_s4 + $0xf0] sm:$0xff] }
   0x7   :  { %2111 = vmatprep.subr.bf16.mxu1 %v2846_v7  ;;  %v2872_v16 = vpack.c.bf16 %v364_v12, %v360_v10  ;;  %v368_v17 = vld [vmem:[%s3574_s4 + $0x88] sm:$0xff]  ;;  %v2881_v19 = vpack.c.bf16 %v363_v14, %v359_v13  ;;  %v367_v21 = vld [vmem:[%s3574_s4 + $0x80] sm:$0xff]  ;;  %v386_v1 = vld [vmem:[%s3574_s4 + $0x118] sm:$0xff] }
   0x8   :  { %v372_v18 = vld [vmem:[%s3574_s4 + $0xa8] sm:$0xff]  ;;  %2113 = vmatpush1.bf16.msra.mxu1 %v2857_v11  ;;  %2048 = vmatmul.mubr.msk.f32.vlgmr.msra.gmra.mrb[0].mxu0 %vm37_vm1, %v32_v4  ;;  %v371_v22 = vld [vmem:[%s3574_s4 + $0xa0] sm:$0xff] }
   0x9   :  { %2115 = vmatprep.subr.bf16.mxu1 %v2872_v16  ;;  %v2885_v20 = vpack.c.bf16 %v372_v18, %v368_v17  ;;  %2050 = vmatprep.mubr.msk.f32.mxu0 %vm37_vm1, %v33_v15  ;;  %v376_v24 = vld [vmem:[%s3574_s4 + $0xc8] sm:$0xff]  ;;  %v2904_v26 = vpack.c.bf16 %v371_v22, %v367_v21  ;;  %v375_v28 = vld [vmem:[%s3574_s4 + $0xc0] sm:$0xff]  ;;  %v154_v17 = vld [vmem:[%s3575_s3 + $0x10] sm:$0xff] }
   0xa   :  { %v380_v25 = vld [vmem:[%s3574_s4 + $0xe8] sm:$0xff]  ;;  %v379_v29 = vld [vmem:[%s3574_s4 + $0xe0] sm:$0xff]  ;;  %v158_v18 = vld [vmem:[%s3575_s3 + $0x30] sm:$0xff] }
   0xb   :  { %v2908_v27 = vpack.c.bf16 %v380_v25, %v376_v24  ;;  %v384_v30 = vld [vmem:[%s3574_s4 + $0x108] sm:$0xff]  ;;  %v2923_v32 = vpack.c.bf16 %v379_v29, %v375_v28  ;;  %v383_v34 = vld [vmem:[%s3574_s4 + $0x100] sm:$0xff]  ;;  %v163_v21 = vld [vmem:[%s3575_s3 + $0x58] sm:$0xff]  ;;  %v2104_v24 = vpack.c.bf16 %v158_v18, %v154_v17 }
   0xc   :  { %2117 = vmatpush1.bf16.msra.mxu1 %v2881_v19  ;;  %2051 = vmatmul.mubr.msk.f32.gmra.mrb[2].mxu0 %vm37_vm1, %v34_v23  ;;  %v388_v31 = vld [vmem:[%s3574_s4 + $0x128] sm:$0xff]  ;;  %v387_v35 = vld [vmem:[%s3574_s4 + $0x120] sm:$0xff]  ;;  %v167_v22 = vld [vmem:[%s3575_s3 + $0x78] sm:$0xff] }
   0xd   :  { %2119 = vmatprep.subr.bf16.mxu1 %v2885_v20  ;;  %v2926_v33 = vpack.c.bf16 %v388_v31, %v384_v30  ;;  %v2935_v36 = vpack.c.bf16 %v387_v35, %v383_v34  ;;  %v392_v37 = vld [vmem:[%s3574_s4 + $0x148] sm:$0xff]  ;;  %v391_v42 = vld [vmem:[%s3574_s4 + $0x140] sm:$0xff]  ;;  %261 = vmatprep.mubr.f32.mxu0 %v2779_v6  ;;  %v2106_v29 = vpack.c.bf16 %v167_v22, %v163_v21  ;;  %v162_v30 = vld [vmem:[%s3575_s3 + $0x50] sm:$0xff] }
   0xe   :  { %v396_v38 = vld [vmem:[%s3574_s4 + $0x168] sm:$0xff]  ;;  %v395_v44 = vld [vmem:[%s3574_s4 + $0x160] sm:$0xff]  ;;  %v166_v31 = vld [vmem:[%s3575_s3 + $0x70] sm:$0xff] }
   0xf   :  { %v2945_v39 = vpack.c.bf16 %v396_v38, %v392_v37  ;;  %v153_v40 = vld [vmem:[%s3575_s3 + $0x8] sm:$0xff]  ;;  %v152_v45 = vld [vmem:[%s3575_s3] sm:$0xff]  ;;  %v2966_v47 = vpack.c.bf16 %v395_v44, %v391_v42  ;;  %v354_v34 = vld [vmem:[%s3574_s4 + $0x18] sm:$0xff]  ;;  %v2108_v37 = vpack.c.bf16 %v166_v31, %v162_v30 }
  0x10   :  { %2121 = vmatpush1.bf16.msra.mxu1 %v2904_v26  ;;  %v157_v41 = vld [vmem:[%s3575_s3 + $0x28] sm:$0xff]  ;;  %v156_v46 = vld [vmem:[%s3575_s3 + $0x20] sm:$0xff]  ;;  %v358_v35 = vld [vmem:[%s3574_s4 + $0x38] sm:$0xff] }
  0x11   :  { %2123 = vmatprep.subr.bf16.mxu1 %v2908_v27  ;;  %v2094_v43 = vpack.c.bf16 %v157_v41, %v153_v40  ;;  %v2096_v48 = vpack.c.bf16 %v156_v46, %v152_v45  ;;  %v400_v49 = vld [vmem:[%s3574_s4 + $0x188] sm:$0xff]  ;;  %v399_v54 = vld [vmem:[%s3574_s4 + $0x180] sm:$0xff]  ;;  %v3073_v40 = vpack.c.bf16 %v358_v35, %v354_v34  ;;  %v353_v41 = vld [vmem:[%s3574_s4 + $0x10] sm:$0xff] }
  0x12   :  { %v404_v50 = vld [vmem:[%s3574_s4 + $0x1a8] sm:$0xff]  ;;  %v403_v56 = vld [vmem:[%s3574_s4 + $0x1a0] sm:$0xff]  ;;  %v357_v42 = vld [vmem:[%s3574_s4 + $0x30] sm:$0xff] }
  0x13   :  { %2095 = vmatprep.subr.bf16.mxu0 %v2094_v43  ;;  %v2975_v51 = vpack.c.bf16 %v404_v50, %v400_v49  ;;  %v161_v52 = vld [vmem:[%s3575_s3 + $0x48] sm:$0xff]  ;;  %v160_v57 = vld [vmem:[%s3575_s3 + $0x40] sm:$0xff]  ;;  %v2993_v58 = vpack.c.bf16 %v403_v56, %v399_v54  ;;  %v362_v43 = vld [vmem:[%s3574_s4 + $0x58] sm:$0xff]  ;;  %v3089_v45 = vpack.c.bf16 %v357_v42, %v353_v41  ;;  %v170_v42 = vlaneseq }
  0x14   :  { %2125 = vmatpush1.bf16.msra.mxu1 %v2923_v32  ;;  %2097 = vmatpush1.bf16.msra.mxu0 %v2096_v48  ;;  %v165_v53 = vld [vmem:[%s3575_s3 + $0x68] sm:$0xff]  ;;  %v164_v59 = vld [vmem:[%s3575_s3 + $0x60] sm:$0xff]  ;;  %v366_v44 = vld [vmem:[%s3574_s4 + $0x78] sm:$0xff] }
  0x15   :  { %2127 = vmatprep.subr.bf16.mxu1 %v2926_v33  ;;  %v2098_v55 = vpack.c.bf16 %v165_v53, %v161_v52  ;;  %v2100_v60 = vpack.c.bf16 %v164_v59, %v160_v57  ;;  %v408_v61 = vld [vmem:[%s3574_s4 + $0x1c8] sm:$0xff]  ;;  %v407_v2 = vld [vmem:[%s3574_s4 + $0x1c0] sm:$0xff]  ;;  %v3092_v46 = vpack.c.bf16 %v366_v44, %v362_v43  ;;  %v361_v48 = vld [vmem:[%s3574_s4 + $0x50] sm:$0xff]  ;;  %v171_v43 = vshrl.u32 %v170_v42, 7 }
  0x16   :  { %v412_v62 = vld [vmem:[%s3574_s4 + $0x1e8] sm:$0xff]  ;;  %v411_v4 = vld [vmem:[%s3574_s4 + $0x1e0] sm:$0xff]  ;;  %v365_v49 = vld [vmem:[%s3574_s4 + $0x70] sm:$0xff] }
  0x17   :  { %2099 = vmatprep.subr.bf16.mxu0 %v2098_v55  ;;  %v3005_v63 = vpack.c.bf16 %v412_v62, %v408_v61  ;;  %v3020_v5 = vpack.c.bf16 %v411_v4, %v407_v2  ;;  %v1990_v13 = vld [vmem:[%s3576_s2] ss:$0 sm:$0xff]  ;;  %v370_v50 = vld [vmem:[%s3574_s4 + $0x98] sm:$0xff]  ;;  %v3109_v53 = vpack.c.bf16 %v365_v49, %v361_v48  ;;  %v369_v55 = vld [vmem:[%s3574_s4 + $0x90] sm:$0xff]  ;;  %v172_v44 = vsub.s32 0, %v171_v43 }
  0x18   :  { %2129 = vmatpush1.bf16.msra.mxu1 %v2935_v36  ;;  %2101 = vmatpush1.bf16.msra.mxu0 %v2100_v60  ;;  %v374_v52 = vld [vmem:[%s3574_s4 + $0xb8] sm:$0xff]  ;;  %v373_v56 = vld [vmem:[%s3574_s4 + $0xb0] sm:$0xff]  ;;  %v168_v48 = vld [vmem:[%s3577_s5] sm:$0xf] }
  0x19   :  { %2131 = vmatprep.subr.bf16.mxu1 %v2945_v39  ;;  %2103 = vmatprep.subr.bf16.mxu0 %v2102_v3  ;;  %v3112_v54 = vpack.c.bf16 %v374_v52, %v370_v50  ;;  %v378_v57 = vld [vmem:[%s3574_s4 + $0xd8] sm:$0xff]  ;;  %v3128_v60 = vpack.c.bf16 %v373_v56, %v369_v55  ;;  %v377_v62 = vld [vmem:[%s3574_s4 + $0xd0] sm:$0xff]  ;;  %v176_v50 = vsub.s32 1, %v171_v43  ;;  %v173_v55 = vrot.slane %v168_v48, %v172_v44 }
  0x1a   :  { %v382_v59 = vld [vmem:[%s3574_s4 + $0xf8] sm:$0xff]  ;;  %v3147_v3 = vpack.c.bf16 %v381_v0, %v377_v62  ;;  %v397_v17 = vld [vmem:[%s3574_s4 + $0x170] sm:$0xff] }
  0x1b   :  { %v3132_v61 = vpack.c.bf16 %v382_v59, %v378_v57  ;;  %v390_v2 = vld [vmem:[%s3574_s4 + $0x138] sm:$0xff]  ;;  %v409_v34 = vld [vmem:[%s3574_s4 + $0x1d0] sm:$0xff]  ;;  %v177_v56 = vrot.slane %v168_v48, %v176_v50 }
  0x1c   :  { %2133 = vmatpush1.bf16.msra.mxu1 %v2966_v47  ;;  %v3150_v4 = vpack.c.bf16 %v390_v2, %v386_v1  ;;  %v402_v18 = vld [vmem:[%s3574_s4 + $0x198] sm:$0xff]  ;;  %v413_v35 = vld [vmem:[%s3574_s4 + $0x1f0] sm:$0xff]  ;;  %v180_v1 = vsub.s32 2, %v171_v43 }
  0x1d   :  { %2135 = vmatprep.subr.bf16.mxu1 %v2975_v51  ;;  %v406_v21 = vld [vmem:[%s3574_s4 + $0x1b8] sm:$0xff] }
  0x20   :  { %2137 = vmatpush1.bf16.msra.mxu1 %v2993_v58 }
  0x21   :  { %2139 = vmatprep.subr.bf16.mxu1 %v3005_v63 }
  0x24   :  { %2141 = vmatpush1.bf16.msra.mxu1 %v3020_v5 }
  0x25   :  { %2175 = vmatprep.subr.bf16.mxu1 %v2846_v7 }
  0x27   :  { %480 = vmatmul.mubr.f32.vlgmr.msra.gmra.mrb[0].mxu1 %v2779_v6 }
  0x28   :  { %2177 = vmatpush1.bf16.msra.mxu1 %v2857_v11  ;;  %649 = vmatprep.mubr.f32.mxu1 %v2779_v6 }
  0x29   :  { %2179 = vmatprep.subr.bf16.mxu1 %v2872_v16 }
  0x2c   :  { %2181 = vmatpush1.bf16.msra.mxu1 %v2881_v19 }
  0x2d   :  { %2183 = vmatprep.subr.bf16.mxu1 %v2885_v20 }
  0x30   :  { %2185 = vmatpush1.bf16.msra.mxu1 %v2904_v26 }
  0x31   :  { %2187 = vmatprep.subr.bf16.mxu1 %v2908_v27 }
  0x34   :  { %2189 = vmatpush1.bf16.msra.mxu1 %v2923_v32 }
  0x35   :  { %2191 = vmatprep.subr.bf16.mxu1 %v2926_v33 }
  0x38   :  { %2193 = vmatpush1.bf16.msra.mxu1 %v2935_v36 }
  0x39   :  { %2195 = vmatprep.subr.bf16.mxu1 %v2945_v39 }
  0x3c   :  { %2197 = vmatpush1.bf16.msra.mxu1 %v2966_v47 }
  0x3d   :  { %2199 = vmatprep.subr.bf16.mxu1 %v2975_v51 }
  0x40   :  { %2201 = vmatpush1.bf16.msra.mxu1 %v2993_v58 }
  0x41   :  { %2203 = vmatprep.subr.bf16.mxu1 %v3005_v63 }
  0x44   :  { %2205 = vmatpush1.bf16.msra.mxu1 %v3020_v5 }
  0x45   :  { %2239 = vmatprep.subr.bf16.mxu1 %v2846_v7 }
  0xdb   :  { %v2049_v8 = vpop.f32.mrb[0].mxu0 }
  0xdc   :  { %v120_v9 = vpop.f32.mrb[1].mxu0 }
  0xdf   :  { %v2052_v10 = vpop.f32.mrb[2].mxu0 }
  0xe0   :  { %v140_v12 = vmax.f32 %v2049_v8, %v2052_v10  ;;  %v130_v14 = vpop.f32.mrb[3].mxu0  ;;  %v385_v8 = vld [vmem:[%s3574_s4 + $0x110] sm:$0xff]  ;;  %v394_v10 = vld [vmem:[%s3574_s4 + $0x158] sm:$0xff] }
  0xe1   :  { %v139_v15 = vmax.f32 %v120_v9, %v130_v14  ;;  %v389_v9 = vld [vmem:[%s3574_s4 + $0x130] sm:$0xff] }
  0xe2   :  { %v149_v25 = vadd.f32 %v1990_v13, %v140_v12  ;;  %v398_v12 = vld [vmem:[%s3574_s4 + $0x178] sm:$0xff] }
  0xe3   :  { %v148_v23 = vadd.f32 %v1990_v13, %v139_v15  ;;  %v3165_v13 = vpack.c.bf16 %v389_v9, %v385_v8  ;;  %v3168_v14 = vpack.c.bf16 %v398_v12, %v394_v10  ;;  %v393_v15 = vld [vmem:[%s3574_s4 + $0x150] sm:$0xff]  ;;  %v184_v8 = vsub.s32 3, %v171_v43 }
  0xe4   :  { %v151_v38 = vmax.f32 %v149_v25, 0.0  ;;  %v3183_v22 = vpack.c.bf16 %v397_v17, %v393_v15  ;;  %v405_v25 = vld [vmem:[%s3574_s4 + $0x1b0] sm:$0xff]  ;;  %v181_v10 = vrot.slane %v168_v48, %v180_v1 }
  0xe5   :  { %v150_v28 = vmax.f32 %v148_v23, 0.0  ;;  %v3186_v23 = vpack.c.bf16 %v406_v21, %v402_v18  ;;  %v185_v15 = vrot.slane %v168_v48, %v184_v8 }
  0xe7   :  { %1991 = vmatmul.mubr.msk.f32.vlgmr.msra.gmra.mrb[4].mxu0 %vm190_vm4, %v150_v28 }
  0xe8   :  { %2105 = vmatpush1.bf16.msra.mxu0 %v2104_v24  ;;  %267 = vmatprep.mubr.f32.mxu0 %v2779_v6  ;;  %v401_v24 = vld [vmem:[%s3574_s4 + $0x190] sm:$0xff] }
  0xe9   :  { %2107 = vmatprep.subr.bf16.mxu0 %v2106_v29  ;;  %v414_v29 = vld [vmem:[%s3574_s4 + $0x1f8] sm:$0xff]  ;;  %v3201_v30 = vpack.c.bf16 %v405_v25, %v401_v24 }
  0xeb   :  { %1992 = vmatmul.mubr.msk.f32.gmra.mrb[6].mxu0 %vm190_vm4, %v151_v38 }
  0xec   :  { %2109 = vmatpush1.bf16.msra.mxu0 %v2108_v37  ;;  %338 = vmatprep.mubr.f32.mxu0 %v2779_v6  ;;  %v3213_v37 = vpack.c.bf16 %v413_v35, %v409_v34 }
  0xed   :  { %2143 = vmatprep.subr.bf16.mxu0 %v3073_v40 }
  0xef   :  { %1993 = vmatmul.mubr.msk.f32.vlgmr.msra.gmra.mrb[8].mxu0 %vm190_vm4, %v150_v28  ;;  %v410_v28 = vld [vmem:[%s3574_s4 + $0x1d8] sm:$0xff] }
  0xf0   :  { %2145 = vmatpush1.bf16.msra.mxu0 %v3089_v45  ;;  %344 = vmatprep.mubr.f32.mxu0 %v2779_v6  ;;  %v3204_v31 = vpack.c.bf16 %v414_v29, %v410_v28 }
  0xf1   :  { %2147 = vmatprep.subr.bf16.mxu0 %v3092_v46 }
  0xf3   :  { %1994 = vmatmul.mubr.msk.f32.gmra.mrb[10].mxu0 %vm190_vm4, %v151_v38 }
  0xf4   :  { %2149 = vmatpush1.bf16.msra.mxu0 %v3109_v53  ;;  %550 = vmatprep.mubr.f32.mxu0 %v2779_v6 }
  0xf5   :  { %2151 = vmatprep.subr.bf16.mxu0 %v3112_v54 }
  0xf8   :  { %2153 = vmatpush1.bf16.msra.mxu0 %v3128_v60 }
  0xf9   :  { %2155 = vmatprep.subr.bf16.mxu0 %v3132_v61 }
  0xfa   :  { %v481_v38 = vpop.f32.mrb[0].mxu1 }
  0xfb   :  { %v483_v41 = vpop.f32.mrb[1].mxu1 }
  0xfc   :  { %2157 = vmatpush1.bf16.msra.mxu0 %v3147_v3 }
  0xfd   :  { %2159 = vmatprep.subr.bf16.mxu0 %v3150_v4 }
 0x100   :  { %2161 = vmatpush1.bf16.msra.mxu0 %v3165_v13 }
 0x101   :  { %2163 = vmatprep.subr.bf16.mxu0 %v3168_v14 }
 0x104   :  { %2165 = vmatpush1.bf16.msra.mxu0 %v3183_v22 }
 0x105   :  { %2167 = vmatprep.subr.bf16.mxu0 %v3186_v23 }
 0x108   :  { %2169 = vmatpush1.bf16.msra.mxu0 %v3201_v30 }
 0x109   :  { %2171 = vmatprep.subr.bf16.mxu0 %v3204_v31 }
 0x10c   :  { %2173 = vmatpush1.bf16.msra.mxu0 %v3213_v37 }
 0x10d   :  { %2207 = vmatprep.subr.bf16.mxu0 %v3073_v40 }
 0x10f   :  { %551 = vmatmul.mubr.f32.vlgmr.msra.gmra.mrb[12].mxu0 %v2779_v6 }
 0x110   :  { %2209 = vmatpush1.bf16.msra.mxu0 %v3089_v45  ;;  %720 = vmatprep.mubr.f32.mxu0 %v2779_v6 }
 0x111   :  { %2211 = vmatprep.subr.bf16.mxu0 %v3092_v46 }
 0x114   :  { %2213 = vmatpush1.bf16.msra.mxu0 %v3109_v53 }
 0x115   :  { %2215 = vmatprep.subr.bf16.mxu0 %v3112_v54 }
 0x118   :  { %2217 = vmatpush1.bf16.msra.mxu0 %v3128_v60 }
 0x119   :  { %2219 = vmatprep.subr.bf16.mxu0 %v3132_v61 }
 0x11c   :  { %2221 = vmatpush1.bf16.msra.mxu0 %v3147_v3 }
 0x11d   :  { %2223 = vmatprep.subr.bf16.mxu0 %v3150_v4 }
 0x120   :  { %2225 = vmatpush1.bf16.msra.mxu0 %v3165_v13 }
 0x121   :  { %2227 = vmatprep.subr.bf16.mxu0 %v3168_v14 }
 0x124   :  { %2229 = vmatpush1.bf16.msra.mxu0 %v3183_v22 }
 0x125   :  { %2231 = vmatprep.subr.bf16.mxu0 %v3186_v23 }
 0x128   :  { %2233 = vmatpush1.bf16.msra.mxu0 %v3201_v30 }
 0x129   :  { %2235 = vmatprep.subr.bf16.mxu0 %v3204_v31 }
 0x12c   :  { %2237 = vmatpush1.bf16.msra.mxu0 %v3213_v37 }
 0x12d   :  { %2271 = vmatprep.subr.bf16.mxu0 %v3073_v40 }
 0x1ba   :  { %v263_v49 = vpop.f32.mrb[4].mxu0 }
 0x1bb   :  { %v265_v52 = vpop.f32.mrb[5].mxu0  ;;  %v3245_v18 = vadd.f32 %v263_v49, %v173_v55 }
 0x1bc   :  { %v3243_v12 = vadd.f32 %v265_v52, %v177_v56 }
 0x1bd   :  { %v557_v29 = vadd.f32 %v481_v38, %v3245_v18 }
 0x1be   :  { %v269_v57 = vpop.f32.mrb[6].mxu0  ;;  %v558_v28 = vadd.f32 %v483_v41, %v3243_v12 }
 0x1bf   :  { %v3239_v59 = vadd.f32 %v269_v57, %v173_v55  ;;  %v271_v62 = vpop.f32.mrb[7].mxu0  ;;  %v1995_v35 = vmul.f32 -1.442695, %v557_v29 }
 0x1c0   :  { %v3241_v0 = vadd.f32 %v271_v62, %v177_v56  ;;  %v1996_v34 = vmul.f32 -1.442695, %v558_v28 }
 0x1c2   :  { %v340_v2 = vpop.f32.mrb[8].mxu0  ;;  %2650 = vpow2.f32 %v1996_v34 }
 0x1c3   :  { %v342_v9 = vpop.f32.mrb[9].mxu0  ;;  %2652 = vpow2.f32 %v1995_v35  ;;  %v3253_v50 = vadd.f32 %v340_v2, %v181_v10 }
 0x1c4   :  { %v3255_v49 = vadd.f32 %v342_v9, %v185_v15 }
 0x1c6   :  { %v346_v17 = vpop.f32.mrb[10].mxu0 }
 0x1c7   :  { %v3247_v21 = vadd.f32 %v346_v17, %v181_v10  ;;  %v348_v24 = vpop.f32.mrb[11].mxu0 }
 0x1c8   :  { %v3249_v25 = vadd.f32 %v348_v24, %v185_v15 }
 0x1cc   :  { %v2651_v42 = vpop.eup %2650 }
 0x1cd   :  { %v2653_v43 = vpop.eup %2652  ;;  %v568_v44 = vadd.f32 1.0, %v2651_v42 }
 0x1ce   :  { %v567_v48 = vadd.f32 1.0, %v2653_v43 }
 0x1cf   :  { %2654 = vrcp.f32 %v568_v44 }
 0x1d0   :  { %2656 = vrcp.f32 %v567_v48 }
 0x1d9   :  { %v2655_v57 = vpop.eup %2654 }
 0x1da   :  { %v2657_v62 = vpop.eup %2656  ;;  %v580_v8 = vmul.f32 0.0, %v2655_v57 }
 0x1e2   :  { %v552_v52 = vpop.f32.mrb[12].mxu0 }
 0x1e3   :  { %v559_v55 = vadd.f32 %v552_v52, %v3253_v50  ;;  %v554_v56 = vpop.f32.mrb[13].mxu0 }
 0x1e4   :  { %v560_v38 = vadd.f32 %v554_v56, %v3255_v49 }
 0x1e5   :  { %2658 = vtanh.f32 %v559_v55 }
 0x1e6   :  { %v1997_v41 = vmul.f32 -1.442695, %v560_v38 }
 0x1e8   :  { %2660 = vpow2.f32 %v1997_v41 }
 0x1ef   :  { %v2659_v1 = vpop.eup %2658 }
 0x1f0   :  { %v581_v17 = vmul.f32 %v2659_v1, %v2657_v62 }
 0x1f2   :  { %v2661_v2 = vpop.eup %2660  ;;  %v3259_v10 = vadd.f32 %v581_v17, %v580_v8 }
 0x1f3   :  { %v577_v9 = vadd.f32 1.0, %v2661_v2 }
 0x1f4   :  { %2662 = vtanh.f32 %v3259_v10 }
 0x1f5   :  { %2664 = vrcp.f32 %v577_v9 }
 0x1fe   :  { %v2663_v15 = vpop.eup %2662 }
 0x1ff   :  { %v2665_v24 = vpop.eup %2664 }
 0x200   :  { %v584_v28 = vmul.f32 %v2665_v24, %v2663_v15 }
 0x202   :  { %650 = vmatmul.mubr.f32.vlgmr.msra.gmra.mrb[2].mxu1 %v584_v28  ;;  %721 = vmatmul.mubr.f32.vlgmr.msra.gmra.mrb[14].mxu0 %v584_v28 }
 0x203   :  { %2241 = vmatpush1.bf16.msra.mxu1 %v2857_v11  ;;  %2273 = vmatpush1.bf16.msra.mxu0 %v3089_v45 }
 0x204   :  { %2243 = vmatprep.subr.bf16.mxu1 %v2872_v16  ;;  %2275 = vmatprep.subr.bf16.mxu0 %v3092_v46 }
 0x205   :  { %837 = vmatprep.mubr.f32.mxu1 %v2779_v6  ;;  %908 = vmatprep.mubr.f32.mxu0 %v2779_v6 }
 0x207   :  { %2245 = vmatpush1.bf16.msra.mxu1 %v2881_v19  ;;  %2277 = vmatpush1.bf16.msra.mxu0 %v3109_v53 }
 0x208   :  { %2247 = vmatprep.subr.bf16.mxu1 %v2885_v20  ;;  %2279 = vmatprep.subr.bf16.mxu0 %v3112_v54 }
 0x20b   :  { %2249 = vmatpush1.bf16.msra.mxu1 %v2904_v26  ;;  %2281 = vmatpush1.bf16.msra.mxu0 %v3128_v60 }
 0x20c   :  { %2251 = vmatprep.subr.bf16.mxu1 %v2908_v27  ;;  %2283 = vmatprep.subr.bf16.mxu0 %v3132_v61 }
 0x20f   :  { %2253 = vmatpush1.bf16.msra.mxu1 %v2923_v32  ;;  %2285 = vmatpush1.bf16.msra.mxu0 %v3147_v3 }
 0x210   :  { %2255 = vmatprep.subr.bf16.mxu1 %v2926_v33  ;;  %2287 = vmatprep.subr.bf16.mxu0 %v3150_v4 }
 0x213   :  { %2257 = vmatpush1.bf16.msra.mxu1 %v2935_v36  ;;  %2289 = vmatpush1.bf16.msra.mxu0 %v3165_v13 }
 0x214   :  { %2259 = vmatprep.subr.bf16.mxu1 %v2945_v39  ;;  %2291 = vmatprep.subr.bf16.mxu0 %v3168_v14 }
 0x217   :  { %2261 = vmatpush1.bf16.msra.mxu1 %v2966_v47  ;;  %2293 = vmatpush1.bf16.msra.mxu0 %v3183_v22 }
 0x218   :  { %2263 = vmatprep.subr.bf16.mxu1 %v2975_v51  ;;  %2295 = vmatprep.subr.bf16.mxu0 %v3186_v23 }
 0x21b   :  { %2265 = vmatpush1.bf16.msra.mxu1 %v2993_v58  ;;  %2297 = vmatpush1.bf16.msra.mxu0 %v3201_v30 }
 0x21c   :  { %2267 = vmatprep.subr.bf16.mxu1 %v3005_v63  ;;  %2299 = vmatprep.subr.bf16.mxu0 %v3204_v31 }
 0x21f   :  { %2269 = vmatpush1.bf16.msra.mxu1 %v3020_v5  ;;  %2301 = vmatpush1.bf16.msra.mxu0 %v3213_v37 }
 0x220   :  { %2303 = vmatprep.subr.bf16.mxu1 %v2846_v7  ;;  %2335 = vmatprep.subr.bf16.mxu0 %v3073_v40 }
 0x2d5   :  { %v651_v29 = vpop.f32.mrb[2].mxu1  ;;  %v722_v34 = vpop.f32.mrb[14].mxu0 }
 0x2d6   :  { %v731_v35 = vrot.slane %v651_v29, 6  ;;  %v653_v42 = vpop.f32.mrb[3].mxu1  ;;  %v724_v43 = vpop.f32.mrb[15].mxu0  ;;  %v733_v57 = vrot.slane %v722_v34, 6  ;;  %v763_v29 = vrot.slane %v3259_v10, 6 }
 0x2d7   :  { %v732_v44 = vrot.slane %v653_v42, 6  ;;  %v734_v38 = vrot.slane %v724_v43, 6 }
 0x2d8   :  { %v739_v48 = vadd.f32 %v731_v35, %v3245_v18  ;;  %v741_v1 = vadd.f32 %v733_v57, %v3253_v50 }
 0x2d9   :  { %v740_v52 = vadd.f32 %v732_v44, %v3243_v12  ;;  %v742_v41 = vadd.f32 %v734_v38, %v3255_v49 }
 0x2da   :  { %v1998_v55 = vmul.f32 -1.442695, %v739_v48 }
 0x2db   :  { %v1999_v56 = vmul.f32 -1.442695, %v740_v52  ;;  %v2000_v62 = vmul.f32 -1.442695, %v742_v41 }
 0x2dc   :  { %2666 = vpow2.f32 %v1998_v55 }
 0x2dd   :  { %2668 = vpow2.f32 %v1999_v56 }
 0x2de   :  { %2670 = vpow2.f32 %v2000_v62 }
 0x2df   :  { %2672 = vtanh.f32 %v741_v1 }
 0x2e6   :  { %v2667_v8 = vpop.eup %2666 }
 0x2e7   :  { %v2669_v17 = vpop.eup %2668  ;;  %v749_v2 = vadd.f32 1.0, %v2667_v8 }
 0x2e8   :  { %v750_v9 = vadd.f32 1.0, %v2669_v17  ;;  %v2671_v15 = vpop.eup %2670 }
 0x2e9   :  { %2674 = vrcp.f32 %v749_v2  ;;  %v2673_v24 = vpop.eup %2672  ;;  %v759_v43 = vadd.f32 1.0, %v2671_v15 }
 0x2ea   :  { %2676 = vrcp.f32 %v750_v9 }
 0x2eb   :  { %2678 = vrcp.f32 %v759_v43 }
 0x2f3   :  { %v2675_v28 = vpop.eup %2674 }
 0x2f4   :  { %v2677_v35 = vpop.eup %2676  ;;  %v766_v42 = vmul.f32 %v2675_v28, %v2673_v24 }
 0x2f5   :  { %v765_v34 = vmul.f32 %v2677_v35, %v763_v29  ;;  %v2679_v48 = vpop.eup %2678 }
 0x2f7   :  { %v3301_v44 = vadd.f32 %v766_v42, %v765_v34 }
 0x2f9   :  { %2680 = vtanh.f32 %v3301_v44 }
 0x303   :  { %v2681_v52 = vpop.eup %2680 }
 0x304   :  { %v769_v55 = vmul.f32 %v2681_v52, %v2679_v48 }
 0x306   :  { %v771_v56 = vrot.slane %v769_v55, 2 }
 0x308   :  { %838 = vmatmul.mubr.f32.vlgmr.msra.gmra.mrb[4].mxu1 %v771_v56  ;;  %909 = vmatmul.mubr.f32.vlgmr.msra.gmra.mrb[16].mxu0 %v771_v56 }
 0x309   :  { %2305 = vmatpush1.bf16.msra.mxu1 %v2857_v11  ;;  %2337 = vmatpush1.bf16.msra.mxu0 %v3089_v45 }
 0x30a   :  { %2307 = vmatprep.subr.bf16.mxu1 %v2872_v16  ;;  %2339 = vmatprep.subr.bf16.mxu0 %v3092_v46 }
 0x30b   :  { %1025 = vmatprep.mubr.f32.mxu1 %v2779_v6  ;;  %1096 = vmatprep.mubr.f32.mxu0 %v2779_v6 }
 0x30d   :  { %2309 = vmatpush1.bf16.msra.mxu1 %v2881_v19  ;;  %2341 = vmatpush1.bf16.msra.mxu0 %v3109_v53 }
 0x30e   :  { %2311 = vmatprep.subr.bf16.mxu1 %v2885_v20  ;;  %2343 = vmatprep.subr.bf16.mxu0 %v3112_v54 }
 0x311   :  { %2313 = vmatpush1.bf16.msra.mxu1 %v2904_v26  ;;  %2345 = vmatpush1.bf16.msra.mxu0 %v3128_v60 }
 0x312   :  { %2315 = vmatprep.subr.bf16.mxu1 %v2908_v27  ;;  %2347 = vmatprep.subr.bf16.mxu0 %v3132_v61 }
 0x315   :  { %2317 = vmatpush1.bf16.msra.mxu1 %v2923_v32  ;;  %2349 = vmatpush1.bf16.msra.mxu0 %v3147_v3 }
 0x316   :  { %2319 = vmatprep.subr.bf16.mxu1 %v2926_v33  ;;  %2351 = vmatprep.subr.bf16.mxu0 %v3150_v4 }
 0x319   :  { %2321 = vmatpush1.bf16.msra.mxu1 %v2935_v36  ;;  %2353 = vmatpush1.bf16.msra.mxu0 %v3165_v13 }
 0x31a   :  { %2323 = vmatprep.subr.bf16.mxu1 %v2945_v39  ;;  %2355 = vmatprep.subr.bf16.mxu0 %v3168_v14 }
 0x31d   :  { %2325 = vmatpush1.bf16.msra.mxu1 %v2966_v47  ;;  %2357 = vmatpush1.bf16.msra.mxu0 %v3183_v22 }
 0x31e   :  { %2327 = vmatprep.subr.bf16.mxu1 %v2975_v51  ;;  %2359 = vmatprep.subr.bf16.mxu0 %v3186_v23 }
 0x321   :  { %2329 = vmatpush1.bf16.msra.mxu1 %v2993_v58  ;;  %2361 = vmatpush1.bf16.msra.mxu0 %v3201_v30 }
 0x322   :  { %2331 = vmatprep.subr.bf16.mxu1 %v3005_v63  ;;  %2363 = vmatprep.subr.bf16.mxu0 %v3204_v31 }
 0x325   :  { %2333 = vmatpush1.bf16.msra.mxu1 %v3020_v5  ;;  %2365 = vmatpush1.bf16.msra.mxu0 %v3213_v37 }
 0x326   :  { %2367 = vmatprep.subr.bf16.mxu1 %v2846_v7  ;;  %2399 = vmatprep.subr.bf16.mxu0 %v3073_v40 }
 0x3db   :  { %v839_v10 = vpop.f32.mrb[4].mxu1  ;;  %v910_v38 = vpop.f32.mrb[16].mxu0 }
 0x3dc   :  { %v919_v41 = vrot.slane %v839_v10, 4  ;;  %v841_v57 = vpop.f32.mrb[5].mxu1  ;;  %v912_v62 = vpop.f32.mrb[17].mxu0  ;;  %v921_v28 = vrot.slane %v910_v38, 4  ;;  %v951_v10 = vrot.slane %v3301_v44, 6 }
 0x3dd   :  { %v920_v1 = vrot.slane %v841_v57, 4  ;;  %v922_v15 = vrot.slane %v912_v62, 4 }
 0x3de   :  { %v927_v8 = vadd.f32 %v919_v41, %v3245_v18  ;;  %v929_v35 = vadd.f32 %v921_v28, %v3253_v50 }
 0x3df   :  { %v928_v17 = vadd.f32 %v920_v1, %v3243_v12  ;;  %v930_v24 = vadd.f32 %v922_v15, %v3255_v49 }
 0x3e0   :  { %v2001_v2 = vmul.f32 -1.442695, %v927_v8 }
 0x3e1   :  { %v2002_v9 = vmul.f32 -1.442695, %v928_v17  ;;  %v2003_v29 = vmul.f32 -1.442695, %v930_v24 }
 0x3e2   :  { %2682 = vpow2.f32 %v2001_v2 }
 0x3e3   :  { %2684 = vpow2.f32 %v2002_v9 }
 0x3e4   :  { %2686 = vpow2.f32 %v2003_v29 }
 0x3e5   :  { %2688 = vtanh.f32 %v929_v35 }
 0x3ec   :  { %v2683_v42 = vpop.eup %2682 }
 0x3ed   :  { %v2685_v43 = vpop.eup %2684  ;;  %v937_v34 = vadd.f32 1.0, %v2683_v42 }
 0x3ee   :  { %v938_v48 = vadd.f32 1.0, %v2685_v43  ;;  %v2687_v52 = vpop.eup %2686 }
 0x3ef   :  { %2690 = vrcp.f32 %v937_v34  ;;  %v2689_v55 = vpop.eup %2688  ;;  %v947_v62 = vadd.f32 1.0, %v2687_v52 }
 0x3f0   :  { %2692 = vrcp.f32 %v938_v48 }
 0x3f1   :  { %2694 = vrcp.f32 %v947_v62 }
 0x3f9   :  { %v2691_v56 = vpop.eup %2690 }
 0x3fa   :  { %v2693_v41 = vpop.eup %2692  ;;  %v954_v57 = vmul.f32 %v2691_v56, %v2689_v55 }
 0x3fb   :  { %v953_v38 = vmul.f32 %v2693_v41, %v951_v10  ;;  %v2695_v8 = vpop.eup %2694 }
 0x3fd   :  { %v3343_v1 = vadd.f32 %v954_v57, %v953_v38 }
 0x3ff   :  { %2696 = vtanh.f32 %v3343_v1 }
 0x409   :  { %v2697_v17 = vpop.eup %2696 }
 0x40a   :  { %v957_v2 = vmul.f32 %v2697_v17, %v2695_v8 }
 0x40c   :  { %v959_v9 = vrot.slane %v957_v2, 4  ;;  %v1139_v2 = vrot.slane %v3343_v1, 6 }
 0x40e   :  { %1026 = vmatmul.mubr.f32.vlgmr.msra.gmra.mrb[6].mxu1 %v959_v9  ;;  %1097 = vmatmul.mubr.f32.vlgmr.msra.gmra.mrb[18].mxu0 %v959_v9 }
 0x40f   :  { %2369 = vmatpush1.bf16.msra.mxu1 %v2857_v11  ;;  %2401 = vmatpush1.bf16.msra.mxu0 %v3089_v45 }
 0x410   :  { %2371 = vmatprep.subr.bf16.mxu1 %v2872_v16  ;;  %2403 = vmatprep.subr.bf16.mxu0 %v3092_v46 }
 0x411   :  { %1213 = vmatprep.mubr.f32.mxu1 %v2779_v6  ;;  %1284 = vmatprep.mubr.f32.mxu0 %v2779_v6 }
 0x413   :  { %2373 = vmatpush1.bf16.msra.mxu1 %v2881_v19  ;;  %2405 = vmatpush1.bf16.msra.mxu0 %v3109_v53 }
 0x414   :  { %2375 = vmatprep.subr.bf16.mxu1 %v2885_v20  ;;  %2407 = vmatprep.subr.bf16.mxu0 %v3112_v54 }
 0x417   :  { %2377 = vmatpush1.bf16.msra.mxu1 %v2904_v26  ;;  %2409 = vmatpush1.bf16.msra.mxu0 %v3128_v60 }
 0x418   :  { %2379 = vmatprep.subr.bf16.mxu1 %v2908_v27  ;;  %2411 = vmatprep.subr.bf16.mxu0 %v3132_v61 }
 0x41b   :  { %2381 = vmatpush1.bf16.msra.mxu1 %v2923_v32  ;;  %2413 = vmatpush1.bf16.msra.mxu0 %v3147_v3 }
 0x41c   :  { %2383 = vmatprep.subr.bf16.mxu1 %v2926_v33  ;;  %2415 = vmatprep.subr.bf16.mxu0 %v3150_v4 }
 0x41f   :  { %2385 = vmatpush1.bf16.msra.mxu1 %v2935_v36  ;;  %2417 = vmatpush1.bf16.msra.mxu0 %v3165_v13 }
 0x420   :  { %2387 = vmatprep.subr.bf16.mxu1 %v2945_v39  ;;  %2419 = vmatprep.subr.bf16.mxu0 %v3168_v14 }
 0x423   :  { %2389 = vmatpush1.bf16.msra.mxu1 %v2966_v47  ;;  %2421 = vmatpush1.bf16.msra.mxu0 %v3183_v22 }
 0x424   :  { %2391 = vmatprep.subr.bf16.mxu1 %v2975_v51  ;;  %2423 = vmatprep.subr.bf16.mxu0 %v3186_v23 }
 0x427   :  { %2393 = vmatpush1.bf16.msra.mxu1 %v2993_v58  ;;  %2425 = vmatpush1.bf16.msra.mxu0 %v3201_v30 }
 0x428   :  { %2395 = vmatprep.subr.bf16.mxu1 %v3005_v63  ;;  %2427 = vmatprep.subr.bf16.mxu0 %v3204_v31 }
 0x42b   :  { %2397 = vmatpush1.bf16.msra.mxu1 %v3020_v5  ;;  %2429 = vmatpush1.bf16.msra.mxu0 %v3213_v37 }
 0x42c   :  { %2431 = vmatprep.subr.bf16.mxu1 %v2846_v7  ;;  %2463 = vmatprep.subr.bf16.mxu0 %v3073_v40 }
 0x4e1   :  { %v1027_v44 = vpop.f32.mrb[6].mxu1  ;;  %v1098_v15 = vpop.f32.mrb[18].mxu0 }
 0x4e2   :  { %v1107_v24 = vrot.slane %v1027_v44, 2  ;;  %v1029_v28 = vpop.f32.mrb[7].mxu1  ;;  %v1100_v29 = vpop.f32.mrb[19].mxu0  ;;  %v1109_v56 = vrot.slane %v1098_v15, 2 }
 0x4e3   :  { %v1108_v35 = vrot.slane %v1029_v28, 2  ;;  %v1110_v52 = vrot.slane %v1100_v29, 2 }
 0x4e4   :  { %v1115_v42 = vadd.f32 %v1107_v24, %v3245_v18  ;;  %v1117_v41 = vadd.f32 %v1109_v56, %v3253_v50 }
 0x4e5   :  { %v1116_v43 = vadd.f32 %v1108_v35, %v3243_v12  ;;  %v1118_v55 = vadd.f32 %v1110_v52, %v3255_v49 }
 0x4e6   :  { %v2004_v34 = vmul.f32 -1.442695, %v1115_v42 }
 0x4e7   :  { %v2005_v48 = vmul.f32 -1.442695, %v1116_v43  ;;  %v2006_v10 = vmul.f32 -1.442695, %v1118_v55 }
 0x4e8   :  { %2698 = vpow2.f32 %v2004_v34 }
 0x4e9   :  { %2700 = vpow2.f32 %v2005_v48 }
 0x4ea   :  { %2702 = vpow2.f32 %v2006_v10 }
 0x4eb   :  { %2704 = vtanh.f32 %v1117_v41 }
 0x4f2   :  { %v2699_v57 = vpop.eup %2698 }
 0x4f3   :  { %v2701_v62 = vpop.eup %2700  ;;  %v1125_v38 = vadd.f32 1.0, %v2699_v57 }
 0x4f4   :  { %v1126_v8 = vadd.f32 1.0, %v2701_v62  ;;  %v2703_v12 = vpop.eup %2702 }
 0x4f5   :  { %2706 = vrcp.f32 %v1125_v38  ;;  %v2705_v18 = vpop.eup %2704  ;;  %v1135_v49 = vadd.f32 1.0, %v2703_v12 }
 0x4f6   :  { %2708 = vrcp.f32 %v1126_v8 }
 0x4f7   :  { %2710 = vrcp.f32 %v1135_v49 }
 0x4ff   :  { %v2707_v17 = vpop.eup %2706 }
 0x500   :  { %v2709_v9 = vpop.eup %2708  ;;  %v1142_v44 = vmul.f32 %v2707_v17, %v2705_v18 }
 0x501   :  { %v1141_v15 = vmul.f32 %v2709_v9, %v1139_v2  ;;  %v2711_v50 = vpop.eup %2710 }
 0x503   :  { %v3385_v24 = vadd.f32 %v1142_v44, %v1141_v15 }
 0x505   :  { %2712 = vtanh.f32 %v3385_v24  ;;  %v1315_v9 = vrot.slane %v3385_v24, 6 }
 0x50f   :  { %v2713_v28 = vpop.eup %2712 }
 0x510   :  { %v1145_v29 = vmul.f32 %v2713_v28, %v2711_v50 }
 0x512   :  { %v1147_v35 = vrot.slane %v1145_v29, 6 }
 0x514   :  { %1214 = vmatmul.mubr.f32.vlgmr.msra.gmra.mrb[8].mxu1 %v1147_v35  ;;  %1285 = vmatmul.mubr.f32.vlgmr.msra.gmra.mrb[20].mxu0 %v1147_v35 }
 0x515   :  { %2433 = vmatpush1.bf16.msra.mxu1 %v2857_v11  ;;  %2465 = vmatpush1.bf16.msra.mxu0 %v3089_v45 }
 0x516   :  { %2435 = vmatprep.subr.bf16.mxu1 %v2872_v16  ;;  %2467 = vmatprep.subr.bf16.mxu0 %v3092_v46 }
 0x517   :  { %1386 = vmatprep.mubr.f32.mxu1 %v2779_v6  ;;  %1457 = vmatprep.mubr.f32.mxu0 %v2779_v6 }
 0x519   :  { %2437 = vmatpush1.bf16.msra.mxu1 %v2881_v19  ;;  %2469 = vmatpush1.bf16.msra.mxu0 %v3109_v53 }
 0x51a   :  { %2439 = vmatprep.subr.bf16.mxu1 %v2885_v20  ;;  %2471 = vmatprep.subr.bf16.mxu0 %v3112_v54 }
 0x51d   :  { %2441 = vmatpush1.bf16.msra.mxu1 %v2904_v26  ;;  %2473 = vmatpush1.bf16.msra.mxu0 %v3128_v60 }
 0x51e   :  { %2443 = vmatprep.subr.bf16.mxu1 %v2908_v27  ;;  %2475 = vmatprep.subr.bf16.mxu0 %v3132_v61 }
 0x521   :  { %2445 = vmatpush1.bf16.msra.mxu1 %v2923_v32  ;;  %2477 = vmatpush1.bf16.msra.mxu0 %v3147_v3 }
 0x522   :  { %2447 = vmatprep.subr.bf16.mxu1 %v2926_v33  ;;  %2479 = vmatprep.subr.bf16.mxu0 %v3150_v4 }
 0x525   :  { %2449 = vmatpush1.bf16.msra.mxu1 %v2935_v36  ;;  %2481 = vmatpush1.bf16.msra.mxu0 %v3165_v13 }
 0x526   :  { %2451 = vmatprep.subr.bf16.mxu1 %v2945_v39  ;;  %2483 = vmatprep.subr.bf16.mxu0 %v3168_v14 }
 0x529   :  { %2453 = vmatpush1.bf16.msra.mxu1 %v2966_v47  ;;  %2485 = vmatpush1.bf16.msra.mxu0 %v3183_v22 }
 0x52a   :  { %2455 = vmatprep.subr.bf16.mxu1 %v2975_v51  ;;  %2487 = vmatprep.subr.bf16.mxu0 %v3186_v23 }
 0x52d   :  { %2457 = vmatpush1.bf16.msra.mxu1 %v2993_v58  ;;  %2489 = vmatpush1.bf16.msra.mxu0 %v3201_v30 }
 0x52e   :  { %2459 = vmatprep.subr.bf16.mxu1 %v3005_v63  ;;  %2491 = vmatprep.subr.bf16.mxu0 %v3204_v31 }
 0x531   :  { %2461 = vmatpush1.bf16.msra.mxu1 %v3020_v5  ;;  %2493 = vmatpush1.bf16.msra.mxu0 %v3213_v37 }
 0x532   :  { %2495 = vmatprep.subr.bf16.mxu1 %v2846_v7  ;;  %2527 = vmatprep.subr.bf16.mxu0 %v3073_v40 }
 0x5e7   :  { %v1215_v1 = vpop.f32.mrb[8].mxu1  ;;  %v1286_v42 = vpop.f32.mrb[20].mxu0 }
 0x5e8   :  { %v1291_v43 = vadd.f32 %v1215_v1, %v3239_v59  ;;  %v1217_v34 = vpop.f32.mrb[9].mxu1  ;;  %v1288_v48 = vpop.f32.mrb[21].mxu0  ;;  %v1293_v57 = vadd.f32 %v1286_v42, %v3247_v21 }
 0x5e9   :  { %v1292_v52 = vadd.f32 %v1217_v34, %v3241_v0  ;;  %v1294_v10 = vadd.f32 %v1288_v48, %v3249_v25 }
 0x5ea   :  { %v2007_v55 = vmul.f32 -1.442695, %v1291_v43 }
 0x5eb   :  { %v2008_v56 = vmul.f32 -1.442695, %v1292_v52  ;;  %v2009_v41 = vmul.f32 -1.442695, %v1294_v10 }
 0x5ec   :  { %2714 = vpow2.f32 %v2007_v55 }
 0x5ed   :  { %2716 = vpow2.f32 %v2008_v56 }
 0x5ee   :  { %2718 = vpow2.f32 %v2009_v41 }
 0x5ef   :  { %2720 = vtanh.f32 %v1293_v57 }
 0x5f6   :  { %v2715_v62 = vpop.eup %2714 }
 0x5f7   :  { %v2717_v38 = vpop.eup %2716  ;;  %v1301_v8 = vadd.f32 1.0, %v2715_v62 }
 0x5f8   :  { %v1302_v12 = vadd.f32 1.0, %v2717_v38  ;;  %v2719_v18 = vpop.eup %2718 }
 0x5f9   :  { %2722 = vrcp.f32 %v1301_v8  ;;  %v2721_v17 = vpop.eup %2720  ;;  %v1311_v15 = vadd.f32 1.0, %v2719_v18 }
 0x5fa   :  { %2724 = vrcp.f32 %v1302_v12 }
 0x5fb   :  { %2726 = vrcp.f32 %v1311_v15 }
 0x603   :  { %v2723_v2 = vpop.eup %2722 }
 0x604   :  { %v2725_v44 = vpop.eup %2724  ;;  %v1318_v49 = vmul.f32 %v2723_v2, %v2721_v17 }
 0x605   :  { %v1317_v50 = vmul.f32 %v2725_v44, %v1315_v9  ;;  %v2727_v29 = vpop.eup %2726 }
 0x607   :  { %v3427_v28 = vadd.f32 %v1318_v49, %v1317_v50 }
 0x609   :  { %2728 = vtanh.f32 %v3427_v28  ;;  %v1500_v49 = vrot.slane %v3427_v28, 6 }
 0x613   :  { %v2729_v35 = vpop.eup %2728 }
 0x614   :  { %v1321_v1 = vmul.f32 %v2729_v35, %v2727_v29 }
 0x616   :  { %1387 = vmatmul.mubr.f32.vlgmr.msra.gmra.mrb[10].mxu1 %v1321_v1  ;;  %1458 = vmatmul.mubr.f32.vlgmr.msra.gmra.mrb[22].mxu0 %v1321_v1 }
 0x617   :  { %2497 = vmatpush1.bf16.msra.mxu1 %v2857_v11  ;;  %2529 = vmatpush1.bf16.msra.mxu0 %v3089_v45 }
 0x618   :  { %2499 = vmatprep.subr.bf16.mxu1 %v2872_v16  ;;  %2531 = vmatprep.subr.bf16.mxu0 %v3092_v46 }
 0x619   :  { %1574 = vmatprep.mubr.f32.mxu1 %v2779_v6  ;;  %1645 = vmatprep.mubr.f32.mxu0 %v2779_v6 }
 0x61b   :  { %2501 = vmatpush1.bf16.msra.mxu1 %v2881_v19  ;;  %2533 = vmatpush1.bf16.msra.mxu0 %v3109_v53 }
 0x61c   :  { %2503 = vmatprep.subr.bf16.mxu1 %v2885_v20  ;;  %2535 = vmatprep.subr.bf16.mxu0 %v3112_v54 }
 0x61f   :  { %2505 = vmatpush1.bf16.msra.mxu1 %v2904_v26  ;;  %2537 = vmatpush1.bf16.msra.mxu0 %v3128_v60 }
 0x620   :  { %2507 = vmatprep.subr.bf16.mxu1 %v2908_v27  ;;  %2539 = vmatprep.subr.bf16.mxu0 %v3132_v61 }
 0x623   :  { %2509 = vmatpush1.bf16.msra.mxu1 %v2923_v32  ;;  %2541 = vmatpush1.bf16.msra.mxu0 %v3147_v3 }
 0x624   :  { %2511 = vmatprep.subr.bf16.mxu1 %v2926_v33  ;;  %2543 = vmatprep.subr.bf16.mxu0 %v3150_v4 }
 0x627   :  { %2513 = vmatpush1.bf16.msra.mxu1 %v2935_v36  ;;  %2545 = vmatpush1.bf16.msra.mxu0 %v3165_v13 }
 0x628   :  { %2515 = vmatprep.subr.bf16.mxu1 %v2945_v39  ;;  %2547 = vmatprep.subr.bf16.mxu0 %v3168_v14 }
 0x62b   :  { %2517 = vmatpush1.bf16.msra.mxu1 %v2966_v47  ;;  %2549 = vmatpush1.bf16.msra.mxu0 %v3183_v22 }
 0x62c   :  { %2519 = vmatprep.subr.bf16.mxu1 %v2975_v51  ;;  %2551 = vmatprep.subr.bf16.mxu0 %v3186_v23 }
 0x62f   :  { %2521 = vmatpush1.bf16.msra.mxu1 %v2993_v58  ;;  %2553 = vmatpush1.bf16.msra.mxu0 %v3201_v30 }
 0x630   :  { %2523 = vmatprep.subr.bf16.mxu1 %v3005_v63  ;;  %2555 = vmatprep.subr.bf16.mxu0 %v3204_v31 }
 0x633   :  { %2525 = vmatpush1.bf16.msra.mxu1 %v3020_v5  ;;  %2557 = vmatpush1.bf16.msra.mxu0 %v3213_v37 }
 0x634   :  { %2559 = vmatprep.subr.bf16.mxu1 %v2846_v7  ;;  %2591 = vmatprep.subr.bf16.mxu0 %v3073_v40 }
 0x6e9   :  { %v1388_v24 = vpop.f32.mrb[10].mxu1  ;;  %v1459_v42 = vpop.f32.mrb[22].mxu0 }
 0x6ea   :  { %v1468_v43 = vrot.slane %v1388_v24, 6  ;;  %v1390_v34 = vpop.f32.mrb[11].mxu1  ;;  %v1461_v48 = vpop.f32.mrb[23].mxu0  ;;  %v1470_v7 = vrot.slane %v1459_v42, 6 }
 0x6eb   :  { %v1469_v52 = vrot.slane %v1390_v34, 6  ;;  %v1471_v57 = vrot.slane %v1461_v48, 6 }
 0x6ec   :  { %v1476_v55 = vadd.f32 %v1468_v43, %v3239_v59  ;;  %v1478_v40 = vadd.f32 %v1470_v7, %v3247_v21  ;;  %v1887_v7 = vld [vmem:[%s3578_s6 + $0x20] sm:$0xff] }
 0x6ed   :  { %v1477_v56 = vadd.f32 %v1469_v52, %v3241_v0  ;;  %v1479_v62 = vadd.f32 %v1471_v57, %v3249_v25  ;;  %v1883_v52 = vld [vmem:[%s3578_s6] sm:$0xff]  ;;  %v1886_v57 = vld [vmem:[%s3578_s6 + $0x18] sm:$0xff] }
 0x6ee   :  { %v2010_v10 = vmul.f32 -1.442695, %v1476_v55  ;;  %v1884_v55 = vld [vmem:[%s3578_s6 + $0x8] sm:$0xff] }
 0x6ef   :  { %v2011_v41 = vmul.f32 -1.442695, %v1477_v56  ;;  %v2012_v38 = vmul.f32 -1.442695, %v1479_v62  ;;  %v2623_v56 = vpack.c.bf16 %v1884_v55, %v1883_v52 }
 0x6f0   :  { %2730 = vpow2.f32 %v2010_v10  ;;  %v2780_v10 = vmov 0.0|0.0  }
 0x6f1   :  { %2732 = vpow2.f32 %v2011_v41  ;;  %v1885_v41 = vld [vmem:[%s3578_s6 + $0x10] sm:$0xff] }
 0x6f2   :  { %2734 = vpow2.f32 %v2012_v38  ;;  %v2626_v62 = vpack.c.bf16 %v1886_v57, %v1885_v41  ;;  %v1888_v38 = vld [vmem:[%s3578_s6 + $0x28] sm:$0xff] }
 0x6f3   :  { %2736 = vtanh.f32 %v1478_v40  ;;  %v2629_v40 = vpack.c.bf16 %v1888_v38, %v1887_v7 }
 0x6fa   :  { %v2731_v8 = vpop.eup %2730 }
 0x6fb   :  { %v2733_v12 = vpop.eup %2732  ;;  %v1486_v18 = vadd.f32 1.0, %v2731_v8  ;;  %v1889_v8 = vld [vmem:[%s3578_s6 + $0x30] sm:$0xff] }
 0x6fc   :  { %v1487_v17 = vadd.f32 1.0, %v2733_v12  ;;  %v2735_v2 = vpop.eup %2734  ;;  %v1890_v12 = vld [vmem:[%s3578_s6 + $0x38] sm:$0xff] }
 0x6fd   :  { %2738 = vrcp.f32 %v1486_v18  ;;  %v2737_v9 = vpop.eup %2736  ;;  %v1496_v29 = vadd.f32 1.0, %v2735_v2  ;;  %v2632_v18 = vpack.c.bf16 %v1890_v12, %v1889_v8  ;;  %v1892_v2 = vld [vmem:[%s3578_s6 + $0x48] sm:$0xff] }
 0x6fe   :  { %2740 = vrcp.f32 %v1487_v17  ;;  %v1891_v17 = vld [vmem:[%s3578_s6 + $0x40] sm:$0xff] }
 0x6ff   :  { %2742 = vrcp.f32 %v1496_v29 }
 0x707   :  { %v2739_v44 = vpop.eup %2738 }
 0x708   :  { %v2741_v15 = vpop.eup %2740  ;;  %v1503_v50 = vmul.f32 %v2739_v44, %v2737_v9  ;;  %v2635_v9 = vpack.c.bf16 %v1892_v2, %v1891_v17  ;;  %v1893_v44 = vld [vmem:[%s3578_s6 + $0x50] sm:$0xff] }
 0x709   :  { %v1502_v35 = vmul.f32 %v2741_v15, %v1500_v49  ;;  %v2743_v24 = vpop.eup %2742  ;;  %v1894_v49 = vld [vmem:[%s3578_s6 + $0x58] sm:$0xff] }
 0x70a   :  { %v2638_v15 = vpack.c.bf16 %v1894_v49, %v1893_v44 }
 0x70b   :  { %v3469_v1 = vadd.f32 %v1503_v50, %v1502_v35  ;;  %v1895_v50 = vld [vmem:[%s3578_s6 + $0x60] sm:$0xff]  ;;  %v1897_v35 = vld [vmem:[%s3578_s6 + $0x70] sm:$0xff] }
 0x70d   :  { %2744 = vtanh.f32 %v3469_v1 }
 0x717   :  { %v2745_v42 = vpop.eup %2744 }
 0x718   :  { %v1506_v43 = vmul.f32 %v2745_v42, %v2743_v24  ;;  %v13_v42 = vstv %s3579_s7 }
 0x719   :  { %14 = vst [vmem:[#allocation2] sm:$0x1] %v13_v42 }
 0x71a   :  { %v1508_v34 = vrot.slane %v1506_v43, 2 }
 0x71c   :  { %1575 = vmatmul.mubr.f32.vlgmr.msra.gmra.mrb[12].mxu1 %v1508_v34  ;;  %1646 = vmatmul.mubr.f32.vlgmr.msra.gmra.mrb[24].mxu0 %v1508_v34 }
 0x71d   :  { %2561 = vmatpush1.bf16.msra.mxu1 %v2857_v11  ;;  %2593 = vmatpush1.bf16.msra.mxu0 %v3089_v45 }
 0x71e   :  { %2563 = vmatprep.subr.bf16.mxu1 %v2872_v16  ;;  %2595 = vmatprep.subr.bf16.mxu0 %v3092_v46 }
 0x71f   :  { %1762 = vmatprep.mubr.f32.mxu1 %v2779_v6  ;;  %1833 = vmatprep.mubr.f32.mxu0 %v2779_v6 }
 0x721   :  { %2565 = vmatpush1.bf16.msra.mxu1 %v2881_v19  ;;  %2597 = vmatpush1.bf16.msra.mxu0 %v3109_v53 }
 0x722   :  { %2567 = vmatprep.subr.bf16.mxu1 %v2885_v20  ;;  %2599 = vmatprep.subr.bf16.mxu0 %v3112_v54 }
 0x725   :  { %2569 = vmatpush1.bf16.msra.mxu1 %v2904_v26  ;;  %2601 = vmatpush1.bf16.msra.mxu0 %v3128_v60 }
 0x726   :  { %2571 = vmatprep.subr.bf16.mxu1 %v2908_v27  ;;  %2603 = vmatprep.subr.bf16.mxu0 %v3132_v61 }
 0x729   :  { %2573 = vmatpush1.bf16.msra.mxu1 %v2923_v32  ;;  %2605 = vmatpush1.bf16.msra.mxu0 %v3147_v3 }
 0x72a   :  { %2575 = vmatprep.subr.bf16.mxu1 %v2926_v33  ;;  %2607 = vmatprep.subr.bf16.mxu0 %v3150_v4  ;;  %v1688_v4 = vrot.slane %v3469_v1, 6  ;;  %v1898_v1 = vld [vmem:[%s3578_s6 + $0x78] sm:$0xff] }
 0x72b   :  { %v2644_v24 = vpack.c.bf16 %v1898_v1, %v1897_v35 }
 0x72d   :  { %2577 = vmatpush1.bf16.msra.mxu1 %v2935_v36  ;;  %2609 = vmatpush1.bf16.msra.mxu0 %v3165_v13 }
 0x72e   :  { %2579 = vmatprep.subr.bf16.mxu1 %v2945_v39  ;;  %2611 = vmatprep.subr.bf16.mxu0 %v3168_v14 }
 0x731   :  { %2581 = vmatpush1.bf16.msra.mxu1 %v2966_v47  ;;  %2613 = vmatpush1.bf16.msra.mxu0 %v3183_v22 }
 0x732   :  { %2583 = vmatprep.subr.bf16.mxu1 %v2975_v51  ;;  %2615 = vmatprep.subr.bf16.mxu0 %v3186_v23 }
 0x735   :  { %2585 = vmatpush1.bf16.msra.mxu1 %v2993_v58  ;;  %2617 = vmatpush1.bf16.msra.mxu0 %v3201_v30 }
 0x736   :  { %2587 = vmatprep.subr.bf16.mxu1 %v3005_v63  ;;  %2619 = vmatprep.subr.bf16.mxu0 %v3204_v31 }
 0x739   :  { %2589 = vmatpush1.bf16.msra.mxu1 %v3020_v5  ;;  %2621 = vmatpush1.bf16.msra.mxu0 %v3213_v37 }
 0x73a   :  { %2622 = vmatprep.subr.bf16.mxu1 %v2780_v10 }
 0x7ef   :  { %v1576_v11 = vpop.f32.mrb[12].mxu1  ;;  %v1647_v16 = vpop.f32.mrb[24].mxu0 }
 0x7f0   :  { %v1656_v19 = vrot.slane %v1576_v11, 4  ;;  %v1578_v20 = vpop.f32.mrb[13].mxu1  ;;  %v1649_v26 = vpop.f32.mrb[25].mxu0  ;;  %v1658_v58 = vrot.slane %v1647_v16, 4 }
 0x7f1   :  { %v1657_v27 = vrot.slane %v1578_v20, 4  ;;  %v1659_v47 = vrot.slane %v1649_v26, 4 }
 0x7f2   :  { %v1664_v32 = vadd.f32 %v1656_v19, %v3239_v59  ;;  %v1666_v5 = vadd.f32 %v1658_v58, %v3247_v21 }
 0x7f3   :  { %v1665_v33 = vadd.f32 %v1657_v27, %v3241_v0  ;;  %v1667_v51 = vadd.f32 %v1659_v47, %v3249_v25 }
 0x7f4   :  { %v2013_v36 = vmul.f32 -1.442695, %v1664_v32 }
 0x7f5   :  { %v2014_v39 = vmul.f32 -1.442695, %v1665_v33  ;;  %v2015_v63 = vmul.f32 -1.442695, %v1667_v51 }
 0x7f6   :  { %2746 = vpow2.f32 %v2013_v36 }
 0x7f7   :  { %2748 = vpow2.f32 %v2014_v39 }
 0x7f8   :  { %2750 = vpow2.f32 %v2015_v63 }
 0x7f9   :  { %2752 = vtanh.f32 %v1666_v5 }
 0x800   :  { %v2747_v45 = vpop.eup %2746 }
 0x801   :  { %v2749_v46 = vpop.eup %2748  ;;  %v1674_v53 = vadd.f32 1.0, %v2747_v45 }
 0x802   :  { %v1675_v54 = vadd.f32 1.0, %v2749_v46  ;;  %v2751_v60 = vpop.eup %2750 }
 0x803   :  { %2754 = vrcp.f32 %v1674_v53  ;;  %v2753_v61 = vpop.eup %2752  ;;  %v1684_v22 = vadd.f32 1.0, %v2751_v60 }
 0x804   :  { %2756 = vrcp.f32 %v1675_v54 }
 0x805   :  { %2758 = vrcp.f32 %v1684_v22 }
 0x80d   :  { %v2755_v3 = vpop.eup %2754 }
 0x80e   :  { %v2757_v13 = vpop.eup %2756  ;;  %v1691_v14 = vmul.f32 %v2755_v3, %v2753_v61 }
 0x80f   :  { %v1690_v23 = vmul.f32 %v2757_v13, %v1688_v4  ;;  %v2759_v31 = vpop.eup %2758 }
 0x811   :  { %v3509_v30 = vadd.f32 %v1691_v14, %v1690_v23  ;;  %v2019_v23 = vld [vmem:[#allocation2] ss:$0 sm:$0xff] }
 0x813   :  { %2760 = vtanh.f32 %v3509_v30  ;;  %v1876_v54 = vrot.slane %v3509_v30, 6 }
 0x81d   :  { %v2761_v37 = vpop.eup %2760 }
 0x81e   :  { %v1694_v28 = vmul.f32 %v2761_v37, %v2759_v31 }
 0x820   :  { %v1696_v48 = vrot.slane %v1694_v28, 4 }
 0x822   :  { %1763 = vmatmul.mubr.f32.vlgmr.msra.gmra.mrb[14].mxu1 %v1696_v48  ;;  %1834 = vmatmul.mubr.f32.vlgmr.msra.gmra.mrb[26].mxu0 %v1696_v48 }
 0x823   :  { %2624 = vmatpush3.bf16.msra.mxu1 %v2623_v56  ;;  %2085 = vmatprep.mubr.msk.f32.mxu1 %vm2781_vm5, %v2779_v6  ;;  %v1896_v6 = vld [vmem:[%s3578_s6 + $0x68] sm:$0xff] }
 0x824   :  { %2625 = vmatprep.subr.bf16.mxu1 %v2780_v10  ;;  %v2641_v29 = vpack.c.bf16 %v1896_v6, %v1895_v50 }
 0x827   :  { %2627 = vmatpush3.bf16.msra.mxu1 %v2626_v62 }
 0x828   :  { %2628 = vmatprep.subr.bf16.mxu1 %v2780_v10 }
 0x82b   :  { %2630 = vmatpush3.bf16.msra.mxu1 %v2629_v40 }
 0x82c   :  { %2631 = vmatprep.subr.bf16.mxu1 %v2780_v10 }
 0x82f   :  { %2633 = vmatpush3.bf16.msra.mxu1 %v2632_v18 }
 0x830   :  { %2634 = vmatprep.subr.bf16.mxu1 %v2780_v10 }
 0x833   :  { %2636 = vmatpush3.bf16.msra.mxu1 %v2635_v9 }
 0x834   :  { %2637 = vmatprep.subr.bf16.mxu1 %v2780_v10 }
 0x837   :  { %2639 = vmatpush3.bf16.msra.mxu1 %v2638_v15 }
 0x838   :  { %2640 = vmatprep.subr.bf16.mxu1 %v2780_v10 }
 0x83b   :  { %2642 = vmatpush3.bf16.msra.mxu1 %v2641_v29 }
 0x83c   :  { %2643 = vmatprep.subr.bf16.mxu1 %v2780_v10 }
 0x83f   :  { %2645 = vmatpush3.bf16.msra.mxu1 %v2644_v24 }
 0x8f5   :  { %v1764_v43 = vpop.f32.mrb[14].mxu1  ;;  %v1835_v34 = vpop.f32.mrb[26].mxu0 }
 0x8f6   :  { %v1844_v11 = vrot.slane %v1764_v43, 2  ;;  %v1766_v16 = vpop.f32.mrb[15].mxu1  ;;  %v1837_v19 = vpop.f32.mrb[27].mxu0  ;;  %v1846_v47 = vrot.slane %v1835_v34, 2 }
 0x8f7   :  { %v1845_v20 = vrot.slane %v1766_v16, 2  ;;  %v1847_v36 = vrot.slane %v1837_v19, 2 }
 0x8f8   :  { %v1852_v26 = vadd.f32 %v1844_v11, %v3239_v59  ;;  %v1854_v58 = vadd.f32 %v1846_v47, %v3247_v21 }
 0x8f9   :  { %v1853_v27 = vadd.f32 %v1845_v20, %v3241_v0  ;;  %v1855_v39 = vadd.f32 %v1847_v36, %v3249_v25 }
 0x8fa   :  { %v2016_v32 = vmul.f32 -1.442695, %v1852_v26 }
 0x8fb   :  { %v2017_v33 = vmul.f32 -1.442695, %v1853_v27  ;;  %v2018_v51 = vmul.f32 -1.442695, %v1855_v39 }
 0x8fc   :  { %2762 = vpow2.f32 %v2016_v32 }
 0x8fd   :  { %2764 = vpow2.f32 %v2017_v33 }
 0x8fe   :  { %2766 = vpow2.f32 %v2018_v51 }
 0x8ff   :  { %2768 = vtanh.f32 %v1854_v58 }
 0x906   :  { %v2763_v63 = vpop.eup %2762 }
 0x907   :  { %v2765_v5 = vpop.eup %2764  ;;  %v1862_v45 = vadd.f32 1.0, %v2763_v63 }
 0x908   :  { %v1863_v46 = vadd.f32 1.0, %v2765_v5  ;;  %v2767_v59 = vpop.eup %2766 }
 0x909   :  { %2770 = vrcp.f32 %v1862_v45  ;;  %v2769_v0 = vpop.eup %2768  ;;  %v1872_v25 = vadd.f32 1.0, %v2767_v59 }
 0x90a   :  { %2772 = vrcp.f32 %v1863_v46 }
 0x90b   :  { %2774 = vrcp.f32 %v1872_v25 }
 0x913   :  { %v2771_v53 = vpop.eup %2770 }
 0x914   :  { %v2773_v60 = vpop.eup %2772  ;;  %v1879_v61 = vmul.f32 %v2771_v53, %v2769_v0 }
 0x915   :  { %v1878_v3 = vmul.f32 %v2773_v60, %v1876_v54  ;;  %v2775_v21 = vpop.eup %2774 }
 0x917   :  { %v1880_v4 = vadd.f32 %v1879_v61, %v1878_v3 }
 0x919   :  { %2776 = vtanh.f32 %v1880_v4 }
 0x923   :  { %v2777_v13 = vpop.eup %2776 }
 0x924   :  { %v1882_v14 = vmul.f32 %v2777_v13, %v2775_v21 }
 0x926   :  { %v1907_v22 = vrot.slane %v1882_v14, 6 }
 0x928   :  { %2086 = vmatmul.mubr.f32.vlgmr.msra.gmra.mrb[16].mxu1 %v1907_v22 }
 0x9fb   :  { %v1975_v31 = vpop.f32.mrb[16].mxu1 }
 0x9fc   :  { %v1976_v37 = vadd.f32 %v2019_v23, %v1975_v31  ;;  %v2087_v28 = vpop.f32.mrb[17].mxu1 }
 0x9fe   :  { %1980 = vst.msk [vmem:[%s3580_s8] sm:$0x3] %vm1979_vm6, %v1976_v37 }

</bundles_post_ra>
